<compile_context>
chip_gen: v7x
topology: tpu7x:2x2x1
jax: 0.10.0
libtpu: 0.0.40
codegen_flags: <defaults>
</compile_context>

<pallas_src>
import functools
import math

import jax
import jax.numpy as jnp
from jax import lax
from jax.experimental import pallas as pl
from jax.experimental.pallas import tpu as pltpu

_BN_EPS = 1e-5
# MXU operand dtype (accumulation is always f32).  Set to jnp.float32 for bit-exact f32 math.
MATMUL_DTYPE = jnp.bfloat16


# ----------------------------------------------------------------------------
# Fused stage kernel:
#   [optional fully-fused nearest-2x upsample] -> chain of (3x3 conv + affine + opt. ReLU)
#   [-> optional folded final 1x1 conv]
# ----------------------------------------------------------------------------
def _stage_kernel(x_ref, *args, nconv, has_final, upsample, H, W,
                  cins, couts, relus, cmax):
    HW = H * W
    G = W + 1                                   # guard lanes on each side of the flat buffer

    # ---- unpack refs --------------------------------------------------------
    idx = 0
    conv_refs = []
    for _ in range(nconv):
        conv_refs.append((args[idx], args[idx + 1], args[idx + 2]))
        idx += 3
    if has_final:
        wend_ref, bend_ref = args[idx], args[idx + 1]
        idx += 2
    o_ref = args[idx]
    buf_a, buf_b = args[idx + 1], args[idx + 2]
    bufs = (buf_a, buf_b)

    # ---- hoisted constants --------------------------------------------------
    # Column index per flattened spatial position; used to zero the taps that would wrap
    # across a row boundary (only the dx==0 and dx==2 taps need it; y-halos come for free
    # from the zero guard lanes).
    col = lax.broadcasted_iota(jnp.int32, (1, HW), 1) % W
    not_left = col != 0
    not_right = col != (W - 1)

    # Zero ONLY the guard strips (interiors are fully overwritten every conv).  Done every
    # grid step because scratch is per-core and a pl.when(step==0) guard is unsafe under
    # megacore grid splitting; the strips are tiny.
    zg = jnp.zeros((cmax, G), jnp.float32)
    for b in bufs:
        b[:, pl.ds(0, G)] = zg
        b[:, pl.ds(G + HW, G)] = zg

    # ---- stage input -> buffer A interior -----------------------------------
    cin0 = cins[0]
    if upsample:
        # Fully fused nearest-2x upsample.  W-repeat = one tiny MXU matmul per input row with
        # an exact 0/1 repeat matrix (each output element is 1.0 * exactly one input, so the
        # result is exact in any precision); H-repeat = write the repeated row into two
        # consecutive W-lane blocks of the flat buffer.
        hin, win = H // 2, W // 2
        rep = (lax.broadcasted_iota(jnp.int32, (win, W), 0)
               == lax.broadcasted_iota(jnp.int32, (win, W), 1) // 2).astype(jnp.float32)
        x4 = x_ref[0]                                           # (cin0, hin, win)
        for h in range(hin):                                    # static trip count
            row = lax.dot_general(
                x4[:, h, :], rep,
                dimension_numbers=(((1,), (0,)), ((), ())),
                preferred_element_type=jnp.float32)             # (cin0, W)
            buf_a[pl.ds(0, cin0), pl.ds(G + (2 * h) * W, W)] = row
            buf_a[pl.ds(0, cin0), pl.ds(G + (2 * h + 1) * W, W)] = row
    else:
        buf_a[pl.ds(0, cin0), pl.ds(G, HW)] = x_ref[0]          # lane-dense (cin0, HW)

    # ---- chained 3x3 convolutions -------------------------------------------
    cur = 0
    for i in range(nconv):
        w_ref, s_ref, b_ref = conv_refs[i]
        cin, cout = cins[i], couts[i]
        wt = w_ref[...]                                         # (9, cout, cin), MATMUL_DTYPE
        src = bufs[cur]

        acc = jnp.zeros((cout, HW), jnp.float32)
        for dy in range(3):
            for dx in range(3):
                t = dy * 3 + dx
                shift = (dy - 1) * W + (dx - 1)
                tap = src[pl.ds(0, cin), pl.ds(G + shift, HW)]  # (cin, HW) lane-offset slice
                if dx == 0:
                    tap = jnp.where(not_left, tap, 0.0)
                elif dx == 2:
                    tap = jnp.where(not_right, tap, 0.0)
                acc = acc + lax.dot_general(
                    wt[t], tap.astype(MATMUL_DTYPE),
                    dimension_numbers=(((1,), (0,)), ((), ())),
                    preferred_element_type=jnp.float32)         # (cout, HW), lane-dense N

        out = acc * s_ref[...] + b_ref[...]                     # folded BN / conv bias (f32)
        if relus[i]:
            out = jnp.maximum(out, 0.0)

        if i + 1 < nconv:
            nxt = bufs[1 - cur]
            nxt[pl.ds(0, cout), pl.ds(G, HW)] = out             # interior only
            cur = 1 - cur
        else:
            if has_final:
                # Folded dec_end 1x1 conv: result stays in VMEM, no extra HBM round trip.
                fin = lax.dot_general(
                    wend_ref[...], out.astype(MATMUL_DTYPE),
                    dimension_numbers=(((1,), (0,)), ((), ())),
                    preferred_element_type=jnp.float32) + bend_ref[...]
                o_ref[0] = fin.astype(o_ref.dtype)
            else:
                o_ref[0] = out.astype(o_ref.dtype)


# ----------------------------------------------------------------------------
# Stage wrapper
# ----------------------------------------------------------------------------
def fused_stage(x, convs, *, H, W, upsample, final_proj=None):
    """Run one fused decoder stage.

    x: (N, Cin, Hin*Win) activation (flattened spatial on the last axis).
    convs: list of (w9 (9,Cout,Cin), scale (Cout,1), bias (Cout,1), relu: bool).
    H, W: OUTPUT spatial size of the stage (input is H//2, W//2 if upsample).
    final_proj: optional (wend (Cf, Clast), bend (Cf, 1)) folded 1x1 conv.
    Returns (N, Cstage, H*W).
    """
    N = x.shape[0]
    nconv = len(convs)
    cins = tuple(int(c[0].shape[2]) for c in convs)
    couts = tuple(int(c[0].shape[1]) for c in convs)
    relus = tuple(bool(c[3]) for c in convs)
    cmax = max(cins)
    HW = H * W
    G = W + 1

    has_final = final_proj is not None
    c_out_stage = int(final_proj[0].shape[0]) if has_final else couts[-1]

    operands = []
    in_specs = []
    if upsample:
        hin, win = H // 2, W // 2
        x = x.reshape(N, cins[0], hin, win)                     # metadata-only reshape
        in_specs.append(pl.BlockSpec((1, cins[0], hin, win), lambda n: (n, 0, 0, 0)))
    else:
        in_specs.append(pl.BlockSpec((1, cins[0], HW), lambda n: (n, 0, 0)))
    operands.append(x)

    for (w9, s, b, _), ci, co in zip(convs, cins, couts):
        in_specs.append(pl.BlockSpec((9, co, ci), lambda n: (0, 0, 0)))
        in_specs.append(pl.BlockSpec((co, 1), lambda n: (0, 0)))
        in_specs.append(pl.BlockSpec((co, 1), lambda n: (0, 0)))
        operands += [w9, s, b]
    if has_final:
        wend, bend = final_proj
        in_specs.append(pl.BlockSpec(wend.shape, lambda n: (0, 0)))
        in_specs.append(pl.BlockSpec(bend.shape, lambda n: (0, 0)))
        operands += [wend, bend]

    # Two ping-pong guarded activation buffers (only conv i's input and conv i+1's input are
    # live at once).
    scratch = [pltpu.VMEM((cmax, HW + 2 * G), jnp.float32) for _ in range(2)]

    kernel = functools.partial(
        _stage_kernel, nconv=nconv, has_final=has_final, upsample=upsample,
        H=H, W=W, cins=cins, couts=couts, relus=relus, cmax=cmax)

    # VMEM budget from actual block / scratch sizes (double-buffered blocks + headroom),
    # clamped well below v7x's 64 MiB physical VMEM.
    def _nbytes(shape, dt):
        return math.prod(shape) * jnp.dtype(dt).itemsize
    in_bytes = _nbytes(x.shape[1:], x.dtype)
    out_bytes = _nbytes((c_out_stage, HW), jnp.float32)
    w_bytes = sum(int(o.size) * o.dtype.itemsize for o in operands[1:])
    scratch_bytes = 2 * _nbytes((max(cmax, 8), HW + 2 * G), jnp.float32)
    limit = 2 * (in_bytes + out_bytes) + w_bytes + scratch_bytes + 8 * 1024 * 1024
    limit = int(min(max(limit, 16 * 1024 * 1024), 56 * 1024 * 1024))

    return pl.pallas_call(
        kernel,
        out_shape=jax.ShapeDtypeStruct((N, c_out_stage, HW), jnp.float32),
        grid=(N,),
        in_specs=in_specs,
        out_specs=pl.BlockSpec((1, c_out_stage, HW), lambda n: (n, 0, 0)),
        scratch_shapes=scratch,
        compiler_params=pltpu.CompilerParams(
            dimension_semantics=("parallel",),
            vmem_limit_bytes=limit,
        ),
    )(*operands)


# ----------------------------------------------------------------------------
# Deterministic parameter construction (Conv + folded eval-mode BatchNorm)
# ----------------------------------------------------------------------------
def _make_conv(key, kh, kw, cin, cout):
    kw_, kb_ = jax.random.split(key)
    w = 0.1 * jax.random.normal(kw_, (kh, kw, cin, cout), jnp.float32)
    b = 0.05 * jax.random.normal(kb_, (cout,), jnp.float32)
    return w, b


def _make_bn(key, c):
    k1, k2, k3, k4 = jax.random.split(key, 4)
    gamma = 1.0 + 0.1 * jax.random.normal(k1, (c,), jnp.float32)
    beta = 0.05 * jax.random.normal(k2, (c,), jnp.float32)
    mean = 0.1 * jax.random.normal(k3, (c,), jnp.float32)
    var = jax.random.uniform(k4, (c,), jnp.float32, minval=0.5, maxval=1.5)
    return gamma, beta, mean, var


def _fold_bn(conv_bias, bn):
    gamma, beta, mean, var = bn
    scale = gamma / jnp.sqrt(var + _BN_EPS)
    bias = beta + (conv_bias - mean) * scale
    return scale, bias


def _pack_conv3x3(w_hwio, scale, bias, relu):
    kh, kw, cin, cout = w_hwio.shape
    w9 = jnp.transpose(w_hwio, (0, 1, 3, 2)).reshape(kh * kw, cout, cin).astype(MATMUL_DTYPE)
    return (w9, scale.reshape(-1, 1).astype(jnp.float32),
            bias.reshape(-1, 1).astype(jnp.float32), bool(relu))


def make_decoder_params(key, output_dim, emb_dim, filters):
    params = {}
    keys = iter(jax.random.split(key, 128))

    def conv_bn_relu(cin, cout):
        w, b = _make_conv(next(keys), 3, 3, cin, cout)
        scale, bias = _fold_bn(b, _make_bn(next(keys), cout))
        return _pack_conv3x3(w, scale, bias, True)

    # stage 0 = initial_conv (3x3, bias, no BN/ReLU) + ConvBlock(filters[0], filters[0])
    w0, b0 = _make_conv(next(keys), 3, 3, emb_dim, filters[0])
    params["stage_0"] = [
        _pack_conv3x3(w0, jnp.ones_like(b0), b0, False),
        conv_bn_relu(filters[0], filters[0]),
        conv_bn_relu(filters[0], filters[0]),
    ]

    # stage i = UpConv(filters[i-1] -> filters[i]) + ConvBlock(filters[i], filters[i])
    for i in range(1, len(filters)):
        params[f"stage_{i}"] = [
            conv_bn_relu(filters[i - 1], filters[i]),
            conv_bn_relu(filters[i], filters[i]),
            conv_bn_relu(filters[i], filters[i]),
        ]

    # dec_end: 1x1 conv filters[-1] -> output_dim, bias only (folded into the last stage).
    we, be = _make_conv(next(keys), 1, 1, filters[-1], output_dim)
    wend = jnp.transpose(we[0, 0]).astype(MATMUL_DTYPE)         # (output_dim, filters[-1])
    params["dec_end"] = (wend, be.reshape(-1, 1).astype(jnp.float32))
    return params


# ----------------------------------------------------------------------------
# Decoder forward
# ----------------------------------------------------------------------------
def decoder_forward(params, x_nchw, filters):
    N, C, H, W = x_nchw.shape
    x = x_nchw.reshape(N, C, H * W)                             # NCHW consumed directly (free)
    nstages = len(filters)
    x = fused_stage(x, params["stage_0"], H=H, W=W, upsample=False,
                    final_proj=params["dec_end"] if nstages == 1 else None)
    for i in range(1, nstages):
        H, W = 2 * H, 2 * W
        x = fused_stage(x, params[f"stage_{i}"], H=H, W=W, upsample=True,
                        final_proj=params["dec_end"] if i == nstages - 1 else None)
    return x.reshape(N, -1, H, W)                               # (N, output_dim, H, W) NCHW


if __name__ == "__main__":
    key = jax.random.PRNGKey(0)
    k_param, k_x = jax.random.split(key)

    output_dim = 3
    emb_dim = 8
    filters = [16, 8]          # one UpConv stage (spatial x2)
    N, H, W = 2, 8, 8

    params = make_decoder_params(k_param, output_dim, emb_dim, filters)
    x = jax.random.normal(k_x, (N, emb_dim, H, W), jnp.float32)  # NCHW, like PyTorch

    out = decoder_forward(params, x, filters)
    out = jax.block_until_ready(out)

    scale = 2 ** (len(filters) - 1)
    expected_shape = (N, output_dim, H * scale, W * scale)
    assert out.shape == expected_shape, (out.shape, expected_shape)
    assert bool(jnp.all(jnp.isfinite(out)))
    print("KERNEL_OK")
</pallas_src>

<mosaic_0001>
module attributes {stable_mosaic.version = 11 : i64} {
  func.func @_stage_kernel(%arg0: i32, %arg1: memref<1x8x64xf32, #tpu.memory_space<vmem>>, %arg2: memref<9x16x8xbf16, #tpu.memory_space<vmem>>, %arg3: memref<16x1xf32, #tpu.memory_space<vmem>>, %arg4: memref<16x1xf32, #tpu.memory_space<vmem>>, %arg5: memref<9x16x16xbf16, #tpu.memory_space<vmem>>, %arg6: memref<16x1xf32, #tpu.memory_space<vmem>>, %arg7: memref<16x1xf32, #tpu.memory_space<vmem>>, %arg8: memref<9x16x16xbf16, #tpu.memory_space<vmem>>, %arg9: memref<16x1xf32, #tpu.memory_space<vmem>>, %arg10: memref<16x1xf32, #tpu.memory_space<vmem>>, %arg11: memref<1x16x64xf32, #tpu.memory_space<vmem>>, %arg12: memref<16x82xf32, #tpu.memory_space<vmem>>, %arg13: memref<16x82xf32, #tpu.memory_space<vmem>>) attributes {dimension_semantics = [#tpu.dimension_semantics<parallel>], iteration_bounds = array<i64: 2>, scalar_prefetch = 0 : i64, scratch_operands = 2 : i64, tpu.core_type = #tpu.core_type<tc>, window_params = [{transform_indices = @transform_0, window_bounds = array<i64: 1, 8, 64>}, {pipeline_mode = #tpu.pipeline_mode<synchronous>, transform_indices = @transform_1, window_bounds = array<i64: 9, 16, 8>}, {pipeline_mode = #tpu.pipeline_mode<synchronous>, transform_indices = @transform_2, window_bounds = array<i64: 16, 1>}, {pipeline_mode = #tpu.pipeline_mode<synchronous>, transform_indices = @transform_3, window_bounds = array<i64: 16, 1>}, {pipeline_mode = #tpu.pipeline_mode<synchronous>, transform_indices = @transform_4, window_bounds = array<i64: 9, 16, 16>}, {pipeline_mode = #tpu.pipeline_mode<synchronous>, transform_indices = @transform_5, window_bounds = array<i64: 16, 1>}, {pipeline_mode = #tpu.pipeline_mode<synchronous>, transform_indices = @transform_6, window_bounds = array<i64: 16, 1>}, {pipeline_mode = #tpu.pipeline_mode<synchronous>, transform_indices = @transform_7, window_bounds = array<i64: 9, 16, 16>}, {pipeline_mode = #tpu.pipeline_mode<synchronous>, transform_indices = @transform_8, window_bounds = array<i64: 16, 1>}, {pipeline_mode = #tpu.pipeline_mode<synchronous>, transform_indices = @transform_9, window_bounds = array<i64: 16, 1>}, {transform_indices = @transform_10, window_bounds = array<i64: 1, 16, 64>}]} {
    %0 = tpu.iota {dimensions = array<i32: 1>} : vector<1x64xi32>
    %c8_i32 = arith.constant 8 : i32
    %c0_i32 = arith.constant 0 : i32
    %1 = arith.cmpi eq, %c8_i32, %c0_i32 : i32
    %c1_i32 = arith.constant 1 : i32
    %2 = arith.select %1, %c1_i32, %c8_i32 : i32
    %3 = vector.broadcast %2 : i32 to vector<1x64xi32>
    %4 = arith.remsi %0, %3 : vector<1x64xi32>
    %c0_i32_0 = arith.constant 0 : i32
    %5 = vector.broadcast %c0_i32_0 : i32 to vector<1x64xi32>
    %6 = arith.cmpi ne, %4, %5 : vector<1x64xi32>
    %c0_i32_1 = arith.constant 0 : i32
    %7 = vector.broadcast %c0_i32_1 : i32 to vector<1x64xi32>
    %8 = arith.cmpi slt, %4, %7 : vector<1x64xi32>
    %c0_i32_2 = arith.constant 0 : i32
    %9 = arith.cmpi slt, %2, %c0_i32_2 : i32
    %10 = vector.broadcast %9 : i1 to vector<1x64xi1>
    %11 = vector.broadcast %10 : vector<1x64xi1> to vector<1x64xi1>
    %12 = arith.xori %8, %11 : vector<1x64xi1>
    %13 = arith.andi %12, %6 : vector<1x64xi1>
    %14 = vector.broadcast %2 : i32 to vector<1x64xi32>
    %15 = arith.addi %4, %14 : vector<1x64xi32>
    %16 = arith.select %13, %15, %4 : vector<1x64xi1>, vector<1x64xi32>
    %c0_i32_3 = arith.constant 0 : i32
    %17 = vector.broadcast %c0_i32_3 : i32 to vector<1x64xi32>
    %18 = arith.cmpi ne, %16, %17 : vector<1x64xi32>
    %c7_i32 = arith.constant 7 : i32
    %19 = vector.broadcast %c7_i32 : i32 to vector<1x64xi32>
    %20 = arith.cmpi ne, %16, %19 : vector<1x64xi32>
    %cst = arith.constant 0.000000e+00 : f32
    %21 = vector.broadcast %cst : f32 to vector<16x9xf32>
    %c0 = arith.constant 0 : index
    %c0_4 = arith.constant 0 : index
    %22 = vector.load %arg12[%c0, %c0_4] : memref<16x82xf32, #tpu.memory_space<vmem>>, vector<16x9xf32>
    tpu.vector_store %arg12[%c0, %c0_4], %21 {strides = array<i32>} : memref<16x82xf32, #tpu.memory_space<vmem>>, vector<16x9xf32>,
    %c0_5 = arith.constant 0 : index
    %c73 = arith.constant 73 : index
    %23 = vector.load %arg12[%c0_5, %c73] : memref<16x82xf32, #tpu.memory_space<vmem>>, vector<16x9xf32>
    tpu.vector_store %arg12[%c0_5, %c73], %21 {strides = array<i32>} : memref<16x82xf32, #tpu.memory_space<vmem>>, vector<16x9xf32>,
    %c0_6 = arith.constant 0 : index
    %c0_7 = arith.constant 0 : index
    %24 = vector.load %arg13[%c0_6, %c0_7] : memref<16x82xf32, #tpu.memory_space<vmem>>, vector<16x9xf32>
    tpu.vector_store %arg13[%c0_6, %c0_7], %21 {strides = array<i32>} : memref<16x82xf32, #tpu.memory_space<vmem>>, vector<16x9xf32>,
    %c0_8 = arith.constant 0 : index
    %c73_9 = arith.constant 73 : index
    %25 = vector.load %arg13[%c0_8, %c73_9] : memref<16x82xf32, #tpu.memory_space<vmem>>, vector<16x9xf32>
    tpu.vector_store %arg13[%c0_8, %c73_9], %21 {strides = array<i32>} : memref<16x82xf32, #tpu.memory_space<vmem>>, vector<16x9xf32>,
    %c0_10 = arith.constant 0 : index
    %c0_11 = arith.constant 0 : index
    %c0_12 = arith.constant 0 : index
    %26 = vector.load %arg1[%c0_10, %c0_11, %c0_12] : memref<1x8x64xf32, #tpu.memory_space<vmem>>, vector<1x8x64xf32>
    %27 = vector.shape_cast %26 : vector<1x8x64xf32> to vector<8x64xf32>
    %c0_13 = arith.constant 0 : index
    %c9 = arith.constant 9 : index
    %28 = vector.load %arg12[%c0_13, %c9] : memref<16x82xf32, #tpu.memory_space<vmem>>, vector<8x64xf32>
    tpu.vector_store %arg12[%c0_13, %c9], %27 {strides = array<i32>} : memref<16x82xf32, #tpu.memory_space<vmem>>, vector<8x64xf32>,
    %c0_14 = arith.constant 0 : index
    %c0_15 = arith.constant 0 : index
    %c0_16 = arith.constant 0 : index
    %29 = vector.load %arg2[%c0_14, %c0_15, %c0_16] : memref<9x16x8xbf16, #tpu.memory_space<vmem>>, vector<9x16x8xbf16>
    %cst_17 = arith.constant 0.000000e+00 : f32
    %30 = vector.broadcast %cst_17 : f32 to vector<16x64xf32>
    %c0_18 = arith.constant 0 : index
    %c0_19 = arith.constant 0 : index
    %31 = vector.load %arg12[%c0_18, %c0_19] : memref<16x82xf32, #tpu.memory_space<vmem>>, vector<8x64xf32>
    %cst_20 = arith.constant 0.000000e+00 : f32
    %32 = vector.shape_cast %18 : vector<1x64xi1> to vector<1x64xi1>
    %33 = vector.broadcast %32 : vector<1x64xi1> to vector<8x64xi1>
    %34 = vector.broadcast %cst_20 : f32 to vector<8x64xf32>
    %35 = arith.select %33, %31, %34 : vector<8x64xi1>, vector<8x64xf32>
    %36 = vector.extract_strided_slice %29 {offsets = [0, 0, 0], sizes = [1, 16, 8], strides = [1, 1, 1]} : vector<9x16x8xbf16> to vector<1x16x8xbf16>
    %37 = vector.shape_cast %36 : vector<1x16x8xbf16> to vector<16x8xbf16>
    %38 = arith.truncf %35 : vector<8x64xf32> to vector<8x64xbf16>
    %cst_21 = arith.constant dense<0.000000e+00> : vector<16x64xf32>
    %39 = tpu.matmul %37, %38, %cst_21 {dimension_numbers = #tpu.dot_dimension_numbers<[1], [0], [0], [1], [0, 0, 1, 1], [], []>} : vector<16x8xbf16>, vector<8x64xbf16>, vector<16x64xf32> -> vector<16x64xf32>
    %40 = arith.addf %30, %39 : vector<16x64xf32>
    %c0_22 = arith.constant 0 : index
    %c1 = arith.constant 1 : index
    %41 = vector.load %arg12[%c0_22, %c1] : memref<16x82xf32, #tpu.memory_space<vmem>>, vector<8x64xf32>
    %42 = vector.extract_strided_slice %29 {offsets = [1, 0, 0], sizes = [1, 16, 8], strides = [1, 1, 1]} : vector<9x16x8xbf16> to vector<1x16x8xbf16>
    %43 = vector.shape_cast %42 : vector<1x16x8xbf16> to vector<16x8xbf16>
    %44 = arith.truncf %41 : vector<8x64xf32> to vector<8x64xbf16>
    %cst_23 = arith.constant dense<0.000000e+00> : vector<16x64xf32>
    %45 = tpu.matmul %43, %44, %cst_23 {dimension_numbers = #tpu.dot_dimension_numbers<[1], [0], [0], [1], [0, 0, 1, 1], [], []>} : vector<16x8xbf16>, vector<8x64xbf16>, vector<16x64xf32> -> vector<16x64xf32>
    %46 = arith.addf %40, %45 : vector<16x64xf32>
    %c0_24 = arith.constant 0 : index
    %c2 = arith.constant 2 : index
    %47 = vector.load %arg12[%c0_24, %c2] : memref<16x82xf32, #tpu.memory_space<vmem>>, vector<8x64xf32>
    %cst_25 = arith.constant 0.000000e+00 : f32
    %48 = vector.shape_cast %20 : vector<1x64xi1> to vector<1x64xi1>
    %49 = vector.broadcast %48 : vector<1x64xi1> to vector<8x64xi1>
    %50 = vector.broadcast %cst_25 : f32 to vector<8x64xf32>
    %51 = arith.select %49, %47, %50 : vector<8x64xi1>, vector<8x64xf32>
    %52 = vector.extract_strided_slice %29 {offsets = [2, 0, 0], sizes = [1, 16, 8], strides = [1, 1, 1]} : vector<9x16x8xbf16> to vector<1x16x8xbf16>
    %53 = vector.shape_cast %52 : vector<1x16x8xbf16> to vector<16x8xbf16>
    %54 = arith.truncf %51 : vector<8x64xf32> to vector<8x64xbf16>
    %cst_26 = arith.constant dense<0.000000e+00> : vector<16x64xf32>
    %55 = tpu.matmul %53, %54, %cst_26 {dimension_numbers = #tpu.dot_dimension_numbers<[1], [0], [0], [1], [0, 0, 1, 1], [], []>} : vector<16x8xbf16>, vector<8x64xbf16>, vector<16x64xf32> -> vector<16x64xf32>
    %56 = arith.addf %46, %55 : vector<16x64xf32>
    %c0_27 = arith.constant 0 : index
    %c8 = arith.constant 8 : index
    %57 = vector.load %arg12[%c0_27, %c8] : memref<16x82xf32, #tpu.memory_space<vmem>>, vector<8x64xf32>
    %cst_28 = arith.constant 0.000000e+00 : f32
    %58 = vector.shape_cast %18 : vector<1x64xi1> to vector<1x64xi1>
    %59 = vector.broadcast %58 : vector<1x64xi1> to vector<8x64xi1>
    %60 = vector.broadcast %cst_28 : f32 to vector<8x64xf32>
    %61 = arith.select %59, %57, %60 : vector<8x64xi1>, vector<8x64xf32>
    %62 = vector.extract_strided_slice %29 {offsets = [3, 0, 0], sizes = [1, 16, 8], strides = [1, 1, 1]} : vector<9x16x8xbf16> to vector<1x16x8xbf16>
    %63 = vector.shape_cast %62 : vector<1x16x8xbf16> to vector<16x8xbf16>
    %64 = arith.truncf %61 : vector<8x64xf32> to vector<8x64xbf16>
    %cst_29 = arith.constant dense<0.000000e+00> : vector<16x64xf32>
    %65 = tpu.matmul %63, %64, %cst_29 {dimension_numbers = #tpu.dot_dimension_numbers<[1], [0], [0], [1], [0, 0, 1, 1], [], []>} : vector<16x8xbf16>, vector<8x64xbf16>, vector<16x64xf32> -> vector<16x64xf32>
    %66 = arith.addf %56, %65 : vector<16x64xf32>
    %c0_30 = arith.constant 0 : index
    %c9_31 = arith.constant 9 : index
    %67 = vector.load %arg12[%c0_30, %c9_31] : memref<16x82xf32, #tpu.memory_space<vmem>>, vector<8x64xf32>
    %68 = vector.extract_strided_slice %29 {offsets = [4, 0, 0], sizes = [1, 16, 8], strides = [1, 1, 1]} : vector<9x16x8xbf16> to vector<1x16x8xbf16>
    %69 = vector.shape_cast %68 : vector<1x16x8xbf16> to vector<16x8xbf16>
    %70 = arith.truncf %67 : vector<8x64xf32> to vector<8x64xbf16>
    %cst_32 = arith.constant dense<0.000000e+00> : vector<16x64xf32>
    %71 = tpu.matmul %69, %70, %cst_32 {dimension_numbers = #tpu.dot_dimension_numbers<[1], [0], [0], [1], [0, 0, 1, 1], [], []>} : vector<16x8xbf16>, vector<8x64xbf16>, vector<16x64xf32> -> vector<16x64xf32>
    %72 = arith.addf %66, %71 : vector<16x64xf32>
    %c0_33 = arith.constant 0 : index
    %c10 = arith.constant 10 : index
    %73 = vector.load %arg12[%c0_33, %c10] : memref<16x82xf32, #tpu.memory_space<vmem>>, vector<8x64xf32>
    %cst_34 = arith.constant 0.000000e+00 : f32
    %74 = vector.shape_cast %20 : vector<1x64xi1> to vector<1x64xi1>
    %75 = vector.broadcast %74 : vector<1x64xi1> to vector<8x64xi1>
    %76 = vector.broadcast %cst_34 : f32 to vector<8x64xf32>
    %77 = arith.select %75, %73, %76 : vector<8x64xi1>, vector<8x64xf32>
    %78 = vector.extract_strided_slice %29 {offsets = [5, 0, 0], sizes = [1, 16, 8], strides = [1, 1, 1]} : vector<9x16x8xbf16> to vector<1x16x8xbf16>
    %79 = vector.shape_cast %78 : vector<1x16x8xbf16> to vector<16x8xbf16>
    %80 = arith.truncf %77 : vector<8x64xf32> to vector<8x64xbf16>
    %cst_35 = arith.constant dense<0.000000e+00> : vector<16x64xf32>
    %81 = tpu.matmul %79, %80, %cst_35 {dimension_numbers = #tpu.dot_dimension_numbers<[1], [0], [0], [1], [0, 0, 1, 1], [], []>} : vector<16x8xbf16>, vector<8x64xbf16>, vector<16x64xf32> -> vector<16x64xf32>
    %82 = arith.addf %72, %81 : vector<16x64xf32>
    %c0_36 = arith.constant 0 : index
    %c16 = arith.constant 16 : index
    %83 = vector.load %arg12[%c0_36, %c16] : memref<16x82xf32, #tpu.memory_space<vmem>>, vector<8x64xf32>
    %cst_37 = arith.constant 0.000000e+00 : f32
    %84 = vector.shape_cast %18 : vector<1x64xi1> to vector<1x64xi1>
    %85 = vector.broadcast %84 : vector<1x64xi1> to vector<8x64xi1>
    %86 = vector.broadcast %cst_37 : f32 to vector<8x64xf32>
    %87 = arith.select %85, %83, %86 : vector<8x64xi1>, vector<8x64xf32>
    %88 = vector.extract_strided_slice %29 {offsets = [6, 0, 0], sizes = [1, 16, 8], strides = [1, 1, 1]} : vector<9x16x8xbf16> to vector<1x16x8xbf16>
    %89 = vector.shape_cast %88 : vector<1x16x8xbf16> to vector<16x8xbf16>
    %90 = arith.truncf %87 : vector<8x64xf32> to vector<8x64xbf16>
    %cst_38 = arith.constant dense<0.000000e+00> : vector<16x64xf32>
    %91 = tpu.matmul %89, %90, %cst_38 {dimension_numbers = #tpu.dot_dimension_numbers<[1], [0], [0], [1], [0, 0, 1, 1], [], []>} : vector<16x8xbf16>, vector<8x64xbf16>, vector<16x64xf32> -> vector<16x64xf32>
    %92 = arith.addf %82, %91 : vector<16x64xf32>
    %c0_39 = arith.constant 0 : index
    %c17 = arith.constant 17 : index
    %93 = vector.load %arg12[%c0_39, %c17] : memref<16x82xf32, #tpu.memory_space<vmem>>, vector<8x64xf32>
    %94 = vector.extract_strided_slice %29 {offsets = [7, 0, 0], sizes = [1, 16, 8], strides = [1, 1, 1]} : vector<9x16x8xbf16> to vector<1x16x8xbf16>
    %95 = vector.shape_cast %94 : vector<1x16x8xbf16> to vector<16x8xbf16>
    %96 = arith.truncf %93 : vector<8x64xf32> to vector<8x64xbf16>
    %cst_40 = arith.constant dense<0.000000e+00> : vector<16x64xf32>
    %97 = tpu.matmul %95, %96, %cst_40 {dimension_numbers = #tpu.dot_dimension_numbers<[1], [0], [0], [1], [0, 0, 1, 1], [], []>} : vector<16x8xbf16>, vector<8x64xbf16>, vector<16x64xf32> -> vector<16x64xf32>
    %98 = arith.addf %92, %97 : vector<16x64xf32>
    %c0_41 = arith.constant 0 : index
    %c18 = arith.constant 18 : index
    %99 = vector.load %arg12[%c0_41, %c18] : memref<16x82xf32, #tpu.memory_space<vmem>>, vector<8x64xf32>
    %cst_42 = arith.constant 0.000000e+00 : f32
    %100 = vector.shape_cast %20 : vector<1x64xi1> to vector<1x64xi1>
    %101 = vector.broadcast %100 : vector<1x64xi1> to vector<8x64xi1>
    %102 = vector.broadcast %cst_42 : f32 to vector<8x64xf32>
    %103 = arith.select %101, %99, %102 : vector<8x64xi1>, vector<8x64xf32>
    %104 = vector.extract_strided_slice %29 {offsets = [8, 0, 0], sizes = [1, 16, 8], strides = [1, 1, 1]} : vector<9x16x8xbf16> to vector<1x16x8xbf16>
    %105 = vector.shape_cast %104 : vector<1x16x8xbf16> to vector<16x8xbf16>
    %106 = arith.truncf %103 : vector<8x64xf32> to vector<8x64xbf16>
    %cst_43 = arith.constant dense<0.000000e+00> : vector<16x64xf32>
    %107 = tpu.matmul %105, %106, %cst_43 {dimension_numbers = #tpu.dot_dimension_numbers<[1], [0], [0], [1], [0, 0, 1, 1], [], []>} : vector<16x8xbf16>, vector<8x64xbf16>, vector<16x64xf32> -> vector<16x64xf32>
    %108 = arith.addf %98, %107 : vector<16x64xf32>
    %c0_44 = arith.constant 0 : index
    %c0_45 = arith.constant 0 : index
    %109 = vector.load %arg3[%c0_44, %c0_45] : memref<16x1xf32, #tpu.memory_space<vmem>>, vector<16x1xf32>
    %110 = vector.broadcast %109 : vector<16x1xf32> to vector<16x64xf32>
    %111 = arith.mulf %108, %110 : vector<16x64xf32>
    %c0_46 = arith.constant 0 : index
    %c0_47 = arith.constant 0 : index
    %112 = vector.load %arg4[%c0_46, %c0_47] : memref<16x1xf32, #tpu.memory_space<vmem>>, vector<16x1xf32>
    %113 = vector.broadcast %112 : vector<16x1xf32> to vector<16x64xf32>
    %114 = arith.addf %111, %113 : vector<16x64xf32>
    %c0_48 = arith.constant 0 : index
    %c9_49 = arith.constant 9 : index
    %115 = vector.load %arg13[%c0_48, %c9_49] : memref<16x82xf32, #tpu.memory_space<vmem>>, vector<16x64xf32>
    tpu.vector_store %arg13[%c0_48, %c9_49], %114 {strides = array<i32>} : memref<16x82xf32, #tpu.memory_space<vmem>>, vector<16x64xf32>,
    %c0_50 = arith.constant 0 : index
    %c0_51 = arith.constant 0 : index
    %c0_52 = arith.constant 0 : index
    %116 = vector.load %arg5[%c0_50, %c0_51, %c0_52] : memref<9x16x16xbf16, #tpu.memory_space<vmem>>, vector<9x16x16xbf16>
    %cst_53 = arith.constant 0.000000e+00 : f32
    %117 = vector.broadcast %cst_53 : f32 to vector<16x64xf32>
    %c0_54 = arith.constant 0 : index
    %c0_55 = arith.constant 0 : index
    %118 = vector.load %arg13[%c0_54, %c0_55] : memref<16x82xf32, #tpu.memory_space<vmem>>, vector<16x64xf32>
    %cst_56 = arith.constant 0.000000e+00 : f32
    %119 = vector.shape_cast %18 : vector<1x64xi1> to vector<1x64xi1>
    %120 = vector.broadcast %119 : vector<1x64xi1> to vector<16x64xi1>
    %121 = vector.broadcast %cst_56 : f32 to vector<16x64xf32>
    %122 = arith.select %120, %118, %121 : vector<16x64xi1>, vector<16x64xf32>
    %123 = vector.extract_strided_slice %116 {offsets = [0, 0, 0], sizes = [1, 16, 16], strides = [1, 1, 1]} : vector<9x16x16xbf16> to vector<1x16x16xbf16>
    %124 = vector.shape_cast %123 : vector<1x16x16xbf16> to vector<16x16xbf16>
    %125 = arith.truncf %122 : vector<16x64xf32> to vector<16x64xbf16>
    %cst_57 = arith.constant dense<0.000000e+00> : vector<16x64xf32>
    %126 = tpu.matmul %124, %125, %cst_57 {dimension_numbers = #tpu.dot_dimension_numbers<[1], [0], [0], [1], [0, 0, 1, 1], [], []>} : vector<16x16xbf16>, vector<16x64xbf16>, vector<16x64xf32> -> vector<16x64xf32>
    %127 = arith.addf %117, %126 : vector<16x64xf32>
    %c0_58 = arith.constant 0 : index
    %c1_59 = arith.constant 1 : index
    %128 = vector.load %arg13[%c0_58, %c1_59] : memref<16x82xf32, #tpu.memory_space<vmem>>, vector<16x64xf32>
    %129 = vector.extract_strided_slice %116 {offsets = [1, 0, 0], sizes = [1, 16, 16], strides = [1, 1, 1]} : vector<9x16x16xbf16> to vector<1x16x16xbf16>
    %130 = vector.shape_cast %129 : vector<1x16x16xbf16> to vector<16x16xbf16>
    %131 = arith.truncf %128 : vector<16x64xf32> to vector<16x64xbf16>
    %cst_60 = arith.constant dense<0.000000e+00> : vector<16x64xf32>
    %132 = tpu.matmul %130, %131, %cst_60 {dimension_numbers = #tpu.dot_dimension_numbers<[1], [0], [0], [1], [0, 0, 1, 1], [], []>} : vector<16x16xbf16>, vector<16x64xbf16>, vector<16x64xf32> -> vector<16x64xf32>
    %133 = arith.addf %127, %132 : vector<16x64xf32>
    %c0_61 = arith.constant 0 : index
    %c2_62 = arith.constant 2 : index
    %134 = vector.load %arg13[%c0_61, %c2_62] : memref<16x82xf32, #tpu.memory_space<vmem>>, vector<16x64xf32>
    %cst_63 = arith.constant 0.000000e+00 : f32
    %135 = vector.shape_cast %20 : vector<1x64xi1> to vector<1x64xi1>
    %136 = vector.broadcast %135 : vector<1x64xi1> to vector<16x64xi1>
    %137 = vector.broadcast %cst_63 : f32 to vector<16x64xf32>
    %138 = arith.select %136, %134, %137 : vector<16x64xi1>, vector<16x64xf32>
    %139 = vector.extract_strided_slice %116 {offsets = [2, 0, 0], sizes = [1, 16, 16], strides = [1, 1, 1]} : vector<9x16x16xbf16> to vector<1x16x16xbf16>
    %140 = vector.shape_cast %139 : vector<1x16x16xbf16> to vector<16x16xbf16>
    %141 = arith.truncf %138 : vector<16x64xf32> to vector<16x64xbf16>
    %cst_64 = arith.constant dense<0.000000e+00> : vector<16x64xf32>
    %142 = tpu.matmul %140, %141, %cst_64 {dimension_numbers = #tpu.dot_dimension_numbers<[1], [0], [0], [1], [0, 0, 1, 1], [], []>} : vector<16x16xbf16>, vector<16x64xbf16>, vector<16x64xf32> -> vector<16x64xf32>
    %143 = arith.addf %133, %142 : vector<16x64xf32>
    %c0_65 = arith.constant 0 : index
    %c8_66 = arith.constant 8 : index
    %144 = vector.load %arg13[%c0_65, %c8_66] : memref<16x82xf32, #tpu.memory_space<vmem>>, vector<16x64xf32>
    %cst_67 = arith.constant 0.000000e+00 : f32
    %145 = vector.shape_cast %18 : vector<1x64xi1> to vector<1x64xi1>
    %146 = vector.broadcast %145 : vector<1x64xi1> to vector<16x64xi1>
    %147 = vector.broadcast %cst_67 : f32 to vector<16x64xf32>
    %148 = arith.select %146, %144, %147 : vector<16x64xi1>, vector<16x64xf32>
    %149 = vector.extract_strided_slice %116 {offsets = [3, 0, 0], sizes = [1, 16, 16], strides = [1, 1, 1]} : vector<9x16x16xbf16> to vector<1x16x16xbf16>
    %150 = vector.shape_cast %149 : vector<1x16x16xbf16> to vector<16x16xbf16>
    %151 = arith.truncf %148 : vector<16x64xf32> to vector<16x64xbf16>
    %cst_68 = arith.constant dense<0.000000e+00> : vector<16x64xf32>
    %152 = tpu.matmul %150, %151, %cst_68 {dimension_numbers = #tpu.dot_dimension_numbers<[1], [0], [0], [1], [0, 0, 1, 1], [], []>} : vector<16x16xbf16>, vector<16x64xbf16>, vector<16x64xf32> -> vector<16x64xf32>
    %153 = arith.addf %143, %152 : vector<16x64xf32>
    %c0_69 = arith.constant 0 : index
    %c9_70 = arith.constant 9 : index
    %154 = vector.load %arg13[%c0_69, %c9_70] : memref<16x82xf32, #tpu.memory_space<vmem>>, vector<16x64xf32>
    %155 = vector.extract_strided_slice %116 {offsets = [4, 0, 0], sizes = [1, 16, 16], strides = [1, 1, 1]} : vector<9x16x16xbf16> to vector<1x16x16xbf16>
    %156 = vector.shape_cast %155 : vector<1x16x16xbf16> to vector<16x16xbf16>
    %157 = arith.truncf %154 : vector<16x64xf32> to vector<16x64xbf16>
    %cst_71 = arith.constant dense<0.000000e+00> : vector<16x64xf32>
    %158 = tpu.matmul %156, %157, %cst_71 {dimension_numbers = #tpu.dot_dimension_numbers<[1], [0], [0], [1], [0, 0, 1, 1], [], []>} : vector<16x16xbf16>, vector<16x64xbf16>, vector<16x64xf32> -> vector<16x64xf32>
    %159 = arith.addf %153, %158 : vector<16x64xf32>
    %c0_72 = arith.constant 0 : index
    %c10_73 = arith.constant 10 : index
    %160 = vector.load %arg13[%c0_72, %c10_73] : memref<16x82xf32, #tpu.memory_space<vmem>>, vector<16x64xf32>
    %cst_74 = arith.constant 0.000000e+00 : f32
    %161 = vector.shape_cast %20 : vector<1x64xi1> to vector<1x64xi1>
    %162 = vector.broadcast %161 : vector<1x64xi1> to vector<16x64xi1>
    %163 = vector.broadcast %cst_74 : f32 to vector<16x64xf32>
    %164 = arith.select %162, %160, %163 : vector<16x64xi1>, vector<16x64xf32>
    %165 = vector.extract_strided_slice %116 {offsets = [5, 0, 0], sizes = [1, 16, 16], strides = [1, 1, 1]} : vector<9x16x16xbf16> to vector<1x16x16xbf16>
    %166 = vector.shape_cast %165 : vector<1x16x16xbf16> to vector<16x16xbf16>
    %167 = arith.truncf %164 : vector<16x64xf32> to vector<16x64xbf16>
    %cst_75 = arith.constant dense<0.000000e+00> : vector<16x64xf32>
    %168 = tpu.matmul %166, %167, %cst_75 {dimension_numbers = #tpu.dot_dimension_numbers<[1], [0], [0], [1], [0, 0, 1, 1], [], []>} : vector<16x16xbf16>, vector<16x64xbf16>, vector<16x64xf32> -> vector<16x64xf32>
    %169 = arith.addf %159, %168 : vector<16x64xf32>
    %c0_76 = arith.constant 0 : index
    %c16_77 = arith.constant 16 : index
    %170 = vector.load %arg13[%c0_76, %c16_77] : memref<16x82xf32, #tpu.memory_space<vmem>>, vector<16x64xf32>
    %cst_78 = arith.constant 0.000000e+00 : f32
    %171 = vector.shape_cast %18 : vector<1x64xi1> to vector<1x64xi1>
    %172 = vector.broadcast %171 : vector<1x64xi1> to vector<16x64xi1>
    %173 = vector.broadcast %cst_78 : f32 to vector<16x64xf32>
    %174 = arith.select %172, %170, %173 : vector<16x64xi1>, vector<16x64xf32>
    %175 = vector.extract_strided_slice %116 {offsets = [6, 0, 0], sizes = [1, 16, 16], strides = [1, 1, 1]} : vector<9x16x16xbf16> to vector<1x16x16xbf16>
    %176 = vector.shape_cast %175 : vector<1x16x16xbf16> to vector<16x16xbf16>
    %177 = arith.truncf %174 : vector<16x64xf32> to vector<16x64xbf16>
    %cst_79 = arith.constant dense<0.000000e+00> : vector<16x64xf32>
    %178 = tpu.matmul %176, %177, %cst_79 {dimension_numbers = #tpu.dot_dimension_numbers<[1], [0], [0], [1], [0, 0, 1, 1], [], []>} : vector<16x16xbf16>, vector<16x64xbf16>, vector<16x64xf32> -> vector<16x64xf32>
    %179 = arith.addf %169, %178 : vector<16x64xf32>
    %c0_80 = arith.constant 0 : index
    %c17_81 = arith.constant 17 : index
    %180 = vector.load %arg13[%c0_80, %c17_81] : memref<16x82xf32, #tpu.memory_space<vmem>>, vector<16x64xf32>
    %181 = vector.extract_strided_slice %116 {offsets = [7, 0, 0], sizes = [1, 16, 16], strides = [1, 1, 1]} : vector<9x16x16xbf16> to vector<1x16x16xbf16>
    %182 = vector.shape_cast %181 : vector<1x16x16xbf16> to vector<16x16xbf16>
    %183 = arith.truncf %180 : vector<16x64xf32> to vector<16x64xbf16>
    %cst_82 = arith.constant dense<0.000000e+00> : vector<16x64xf32>
    %184 = tpu.matmul %182, %183, %cst_82 {dimension_numbers = #tpu.dot_dimension_numbers<[1], [0], [0], [1], [0, 0, 1, 1], [], []>} : vector<16x16xbf16>, vector<16x64xbf16>, vector<16x64xf32> -> vector<16x64xf32>
    %185 = arith.addf %179, %184 : vector<16x64xf32>
    %c0_83 = arith.constant 0 : index
    %c18_84 = arith.constant 18 : index
    %186 = vector.load %arg13[%c0_83, %c18_84] : memref<16x82xf32, #tpu.memory_space<vmem>>, vector<16x64xf32>
    %cst_85 = arith.constant 0.000000e+00 : f32
    %187 = vector.shape_cast %20 : vector<1x64xi1> to vector<1x64xi1>
    %188 = vector.broadcast %187 : vector<1x64xi1> to vector<16x64xi1>
    %189 = vector.broadcast %cst_85 : f32 to vector<16x64xf32>
    %190 = arith.select %188, %186, %189 : vector<16x64xi1>, vector<16x64xf32>
    %191 = vector.extract_strided_slice %116 {offsets = [8, 0, 0], sizes = [1, 16, 16], strides = [1, 1, 1]} : vector<9x16x16xbf16> to vector<1x16x16xbf16>
    %192 = vector.shape_cast %191 : vector<1x16x16xbf16> to vector<16x16xbf16>
    %193 = arith.truncf %190 : vector<16x64xf32> to vector<16x64xbf16>
    %cst_86 = arith.constant dense<0.000000e+00> : vector<16x64xf32>
    %194 = tpu.matmul %192, %193, %cst_86 {dimension_numbers = #tpu.dot_dimension_numbers<[1], [0], [0], [1], [0, 0, 1, 1], [], []>} : vector<16x16xbf16>, vector<16x64xbf16>, vector<16x64xf32> -> vector<16x64xf32>
    %195 = arith.addf %185, %194 : vector<16x64xf32>
    %c0_87 = arith.constant 0 : index
    %c0_88 = arith.constant 0 : index
    %196 = vector.load %arg6[%c0_87, %c0_88] : memref<16x1xf32, #tpu.memory_space<vmem>>, vector<16x1xf32>
    %197 = vector.broadcast %196 : vector<16x1xf32> to vector<16x64xf32>
    %198 = arith.mulf %195, %197 : vector<16x64xf32>
    %c0_89 = arith.constant 0 : index
    %c0_90 = arith.constant 0 : index
    %199 = vector.load %arg7[%c0_89, %c0_90] : memref<16x1xf32, #tpu.memory_space<vmem>>, vector<16x1xf32>
    %200 = vector.broadcast %199 : vector<16x1xf32> to vector<16x64xf32>
    %201 = arith.addf %198, %200 : vector<16x64xf32>
    %cst_91 = arith.constant 0.000000e+00 : f32
    %202 = vector.broadcast %cst_91 : f32 to vector<16x64xf32>
    %203 = arith.maximumf %201, %202 : vector<16x64xf32>
    %c0_92 = arith.constant 0 : index
    %c9_93 = arith.constant 9 : index
    %204 = vector.load %arg12[%c0_92, %c9_93] : memref<16x82xf32, #tpu.memory_space<vmem>>, vector<16x64xf32>
    tpu.vector_store %arg12[%c0_92, %c9_93], %203 {strides = array<i32>} : memref<16x82xf32, #tpu.memory_space<vmem>>, vector<16x64xf32>,
    %c0_94 = arith.constant 0 : index
    %c0_95 = arith.constant 0 : index
    %c0_96 = arith.constant 0 : index
    %205 = vector.load %arg8[%c0_94, %c0_95, %c0_96] : memref<9x16x16xbf16, #tpu.memory_space<vmem>>, vector<9x16x16xbf16>
    %cst_97 = arith.constant 0.000000e+00 : f32
    %206 = vector.broadcast %cst_97 : f32 to vector<16x64xf32>
    %c0_98 = arith.constant 0 : index
    %c0_99 = arith.constant 0 : index
    %207 = vector.load %arg12[%c0_98, %c0_99] : memref<16x82xf32, #tpu.memory_space<vmem>>, vector<16x64xf32>
    %cst_100 = arith.constant 0.000000e+00 : f32
    %208 = vector.shape_cast %18 : vector<1x64xi1> to vector<1x64xi1>
    %209 = vector.broadcast %208 : vector<1x64xi1> to vector<16x64xi1>
    %210 = vector.broadcast %cst_100 : f32 to vector<16x64xf32>
    %211 = arith.select %209, %207, %210 : vector<16x64xi1>, vector<16x64xf32>
    %212 = vector.extract_strided_slice %205 {offsets = [0, 0, 0], sizes = [1, 16, 16], strides = [1, 1, 1]} : vector<9x16x16xbf16> to vector<1x16x16xbf16>
    %213 = vector.shape_cast %212 : vector<1x16x16xbf16> to vector<16x16xbf16>
    %214 = arith.truncf %211 : vector<16x64xf32> to vector<16x64xbf16>
    %cst_101 = arith.constant dense<0.000000e+00> : vector<16x64xf32>
    %215 = tpu.matmul %213, %214, %cst_101 {dimension_numbers = #tpu.dot_dimension_numbers<[1], [0], [0], [1], [0, 0, 1, 1], [], []>} : vector<16x16xbf16>, vector<16x64xbf16>, vector<16x64xf32> -> vector<16x64xf32>
    %216 = arith.addf %206, %215 : vector<16x64xf32>
    %c0_102 = arith.constant 0 : index
    %c1_103 = arith.constant 1 : index
    %217 = vector.load %arg12[%c0_102, %c1_103] : memref<16x82xf32, #tpu.memory_space<vmem>>, vector<16x64xf32>
    %218 = vector.extract_strided_slice %205 {offsets = [1, 0, 0], sizes = [1, 16, 16], strides = [1, 1, 1]} : vector<9x16x16xbf16> to vector<1x16x16xbf16>
    %219 = vector.shape_cast %218 : vector<1x16x16xbf16> to vector<16x16xbf16>
    %220 = arith.truncf %217 : vector<16x64xf32> to vector<16x64xbf16>
    %cst_104 = arith.constant dense<0.000000e+00> : vector<16x64xf32>
    %221 = tpu.matmul %219, %220, %cst_104 {dimension_numbers = #tpu.dot_dimension_numbers<[1], [0], [0], [1], [0, 0, 1, 1], [], []>} : vector<16x16xbf16>, vector<16x64xbf16>, vector<16x64xf32> -> vector<16x64xf32>
    %222 = arith.addf %216, %221 : vector<16x64xf32>
    %c0_105 = arith.constant 0 : index
    %c2_106 = arith.constant 2 : index
    %223 = vector.load %arg12[%c0_105, %c2_106] : memref<16x82xf32, #tpu.memory_space<vmem>>, vector<16x64xf32>
    %cst_107 = arith.constant 0.000000e+00 : f32
    %224 = vector.shape_cast %20 : vector<1x64xi1> to vector<1x64xi1>
    %225 = vector.broadcast %224 : vector<1x64xi1> to vector<16x64xi1>
    %226 = vector.broadcast %cst_107 : f32 to vector<16x64xf32>
    %227 = arith.select %225, %223, %226 : vector<16x64xi1>, vector<16x64xf32>
    %228 = vector.extract_strided_slice %205 {offsets = [2, 0, 0], sizes = [1, 16, 16], strides = [1, 1, 1]} : vector<9x16x16xbf16> to vector<1x16x16xbf16>
    %229 = vector.shape_cast %228 : vector<1x16x16xbf16> to vector<16x16xbf16>
    %230 = arith.truncf %227 : vector<16x64xf32> to vector<16x64xbf16>
    %cst_108 = arith.constant dense<0.000000e+00> : vector<16x64xf32>
    %231 = tpu.matmul %229, %230, %cst_108 {dimension_numbers = #tpu.dot_dimension_numbers<[1], [0], [0], [1], [0, 0, 1, 1], [], []>} : vector<16x16xbf16>, vector<16x64xbf16>, vector<16x64xf32> -> vector<16x64xf32>
    %232 = arith.addf %222, %231 : vector<16x64xf32>
    %c0_109 = arith.constant 0 : index
    %c8_110 = arith.constant 8 : index
    %233 = vector.load %arg12[%c0_109, %c8_110] : memref<16x82xf32, #tpu.memory_space<vmem>>, vector<16x64xf32>
    %cst_111 = arith.constant 0.000000e+00 : f32
    %234 = vector.shape_cast %18 : vector<1x64xi1> to vector<1x64xi1>
    %235 = vector.broadcast %234 : vector<1x64xi1> to vector<16x64xi1>
    %236 = vector.broadcast %cst_111 : f32 to vector<16x64xf32>
    %237 = arith.select %235, %233, %236 : vector<16x64xi1>, vector<16x64xf32>
    %238 = vector.extract_strided_slice %205 {offsets = [3, 0, 0], sizes = [1, 16, 16], strides = [1, 1, 1]} : vector<9x16x16xbf16> to vector<1x16x16xbf16>
    %239 = vector.shape_cast %238 : vector<1x16x16xbf16> to vector<16x16xbf16>
    %240 = arith.truncf %237 : vector<16x64xf32> to vector<16x64xbf16>
    %cst_112 = arith.constant dense<0.000000e+00> : vector<16x64xf32>
    %241 = tpu.matmul %239, %240, %cst_112 {dimension_numbers = #tpu.dot_dimension_numbers<[1], [0], [0], [1], [0, 0, 1, 1], [], []>} : vector<16x16xbf16>, vector<16x64xbf16>, vector<16x64xf32> -> vector<16x64xf32>
    %242 = arith.addf %232, %241 : vector<16x64xf32>
    %c0_113 = arith.constant 0 : index
    %c9_114 = arith.constant 9 : index
    %243 = vector.load %arg12[%c0_113, %c9_114] : memref<16x82xf32, #tpu.memory_space<vmem>>, vector<16x64xf32>
    %244 = vector.extract_strided_slice %205 {offsets = [4, 0, 0], sizes = [1, 16, 16], strides = [1, 1, 1]} : vector<9x16x16xbf16> to vector<1x16x16xbf16>
    %245 = vector.shape_cast %244 : vector<1x16x16xbf16> to vector<16x16xbf16>
    %246 = arith.truncf %243 : vector<16x64xf32> to vector<16x64xbf16>
    %cst_115 = arith.constant dense<0.000000e+00> : vector<16x64xf32>
    %247 = tpu.matmul %245, %246, %cst_115 {dimension_numbers = #tpu.dot_dimension_numbers<[1], [0], [0], [1], [0, 0, 1, 1], [], []>} : vector<16x16xbf16>, vector<16x64xbf16>, vector<16x64xf32> -> vector<16x64xf32>
    %248 = arith.addf %242, %247 : vector<16x64xf32>
    %c0_116 = arith.constant 0 : index
    %c10_117 = arith.constant 10 : index
    %249 = vector.load %arg12[%c0_116, %c10_117] : memref<16x82xf32, #tpu.memory_space<vmem>>, vector<16x64xf32>
    %cst_118 = arith.constant 0.000000e+00 : f32
    %250 = vector.shape_cast %20 : vector<1x64xi1> to vector<1x64xi1>
    %251 = vector.broadcast %250 : vector<1x64xi1> to vector<16x64xi1>
    %252 = vector.broadcast %cst_118 : f32 to vector<16x64xf32>
    %253 = arith.select %251, %249, %252 : vector<16x64xi1>, vector<16x64xf32>
    %254 = vector.extract_strided_slice %205 {offsets = [5, 0, 0], sizes = [1, 16, 16], strides = [1, 1, 1]} : vector<9x16x16xbf16> to vector<1x16x16xbf16>
    %255 = vector.shape_cast %254 : vector<1x16x16xbf16> to vector<16x16xbf16>
    %256 = arith.truncf %253 : vector<16x64xf32> to vector<16x64xbf16>
    %cst_119 = arith.constant dense<0.000000e+00> : vector<16x64xf32>
    %257 = tpu.matmul %255, %256, %cst_119 {dimension_numbers = #tpu.dot_dimension_numbers<[1], [0], [0], [1], [0, 0, 1, 1], [], []>} : vector<16x16xbf16>, vector<16x64xbf16>, vector<16x64xf32> -> vector<16x64xf32>
    %258 = arith.addf %248, %257 : vector<16x64xf32>
    %c0_120 = arith.constant 0 : index
    %c16_121 = arith.constant 16 : index
    %259 = vector.load %arg12[%c0_120, %c16_121] : memref<16x82xf32, #tpu.memory_space<vmem>>, vector<16x64xf32>
    %cst_122 = arith.constant 0.000000e+00 : f32
    %260 = vector.shape_cast %18 : vector<1x64xi1> to vector<1x64xi1>
    %261 = vector.broadcast %260 : vector<1x64xi1> to vector<16x64xi1>
    %262 = vector.broadcast %cst_122 : f32 to vector<16x64xf32>
    %263 = arith.select %261, %259, %262 : vector<16x64xi1>, vector<16x64xf32>
    %264 = vector.extract_strided_slice %205 {offsets = [6, 0, 0], sizes = [1, 16, 16], strides = [1, 1, 1]} : vector<9x16x16xbf16> to vector<1x16x16xbf16>
    %265 = vector.shape_cast %264 : vector<1x16x16xbf16> to vector<16x16xbf16>
    %266 = arith.truncf %263 : vector<16x64xf32> to vector<16x64xbf16>
    %cst_123 = arith.constant dense<0.000000e+00> : vector<16x64xf32>
    %267 = tpu.matmul %265, %266, %cst_123 {dimension_numbers = #tpu.dot_dimension_numbers<[1], [0], [0], [1], [0, 0, 1, 1], [], []>} : vector<16x16xbf16>, vector<16x64xbf16>, vector<16x64xf32> -> vector<16x64xf32>
    %268 = arith.addf %258, %267 : vector<16x64xf32>
    %c0_124 = arith.constant 0 : index
    %c17_125 = arith.constant 17 : index
    %269 = vector.load %arg12[%c0_124, %c17_125] : memref<16x82xf32, #tpu.memory_space<vmem>>, vector<16x64xf32>
    %270 = vector.extract_strided_slice %205 {offsets = [7, 0, 0], sizes = [1, 16, 16], strides = [1, 1, 1]} : vector<9x16x16xbf16> to vector<1x16x16xbf16>
    %271 = vector.shape_cast %270 : vector<1x16x16xbf16> to vector<16x16xbf16>
    %272 = arith.truncf %269 : vector<16x64xf32> to vector<16x64xbf16>
    %cst_126 = arith.constant dense<0.000000e+00> : vector<16x64xf32>
    %273 = tpu.matmul %271, %272, %cst_126 {dimension_numbers = #tpu.dot_dimension_numbers<[1], [0], [0], [1], [0, 0, 1, 1], [], []>} : vector<16x16xbf16>, vector<16x64xbf16>, vector<16x64xf32> -> vector<16x64xf32>
    %274 = arith.addf %268, %273 : vector<16x64xf32>
    %c0_127 = arith.constant 0 : index
    %c18_128 = arith.constant 18 : index
    %275 = vector.load %arg12[%c0_127, %c18_128] : memref<16x82xf32, #tpu.memory_space<vmem>>, vector<16x64xf32>
    %cst_129 = arith.constant 0.000000e+00 : f32
    %276 = vector.shape_cast %20 : vector<1x64xi1> to vector<1x64xi1>
    %277 = vector.broadcast %276 : vector<1x64xi1> to vector<16x64xi1>
    %278 = vector.broadcast %cst_129 : f32 to vector<16x64xf32>
    %279 = arith.select %277, %275, %278 : vector<16x64xi1>, vector<16x64xf32>
    %280 = vector.extract_strided_slice %205 {offsets = [8, 0, 0], sizes = [1, 16, 16], strides = [1, 1, 1]} : vector<9x16x16xbf16> to vector<1x16x16xbf16>
    %281 = vector.shape_cast %280 : vector<1x16x16xbf16> to vector<16x16xbf16>
    %282 = arith.truncf %279 : vector<16x64xf32> to vector<16x64xbf16>
    %cst_130 = arith.constant dense<0.000000e+00> : vector<16x64xf32>
    %283 = tpu.matmul %281, %282, %cst_130 {dimension_numbers = #tpu.dot_dimension_numbers<[1], [0], [0], [1], [0, 0, 1, 1], [], []>} : vector<16x16xbf16>, vector<16x64xbf16>, vector<16x64xf32> -> vector<16x64xf32>
    %284 = arith.addf %274, %283 : vector<16x64xf32>
    %c0_131 = arith.constant 0 : index
    %c0_132 = arith.constant 0 : index
    %285 = vector.load %arg9[%c0_131, %c0_132] : memref<16x1xf32, #tpu.memory_space<vmem>>, vector<16x1xf32>
    %286 = vector.broadcast %285 : vector<16x1xf32> to vector<16x64xf32>
    %287 = arith.mulf %284, %286 : vector<16x64xf32>
    %c0_133 = arith.constant 0 : index
    %c0_134 = arith.constant 0 : index
    %288 = vector.load %arg10[%c0_133, %c0_134] : memref<16x1xf32, #tpu.memory_space<vmem>>, vector<16x1xf32>
    %289 = vector.broadcast %288 : vector<16x1xf32> to vector<16x64xf32>
    %290 = arith.addf %287, %289 : vector<16x64xf32>
    %cst_135 = arith.constant 0.000000e+00 : f32
    %291 = vector.broadcast %cst_135 : f32 to vector<16x64xf32>
    %292 = arith.maximumf %290, %291 : vector<16x64xf32>
    %c0_136 = arith.constant 0 : index
    %c0_137 = arith.constant 0 : index
    %c0_138 = arith.constant 0 : index
    %293 = vector.load %arg11[%c0_136, %c0_137, %c0_138] : memref<1x16x64xf32, #tpu.memory_space<vmem>>, vector<1x16x64xf32>
    %294 = vector.shape_cast %293 : vector<1x16x64xf32> to vector<16x64xf32>
    %295 = vector.shape_cast %292 : vector<16x64xf32> to vector<1x16x64xf32>
    tpu.vector_store %arg11[%c0_136, %c0_137, %c0_138], %295 {strides = array<i32>} : memref<1x16x64xf32, #tpu.memory_space<vmem>>, vector<1x16x64xf32>,
    return
  }
  func.func @transform_0(%arg0: i32) -> (i32, i32, i32) {
    %c0_i32 = arith.constant 0 : i32
    %c0_i32_0 = arith.constant 0 : i32
    %c0_i32_1 = arith.constant 0 : i32
    return %arg0, %c0_i32, %c0_i32_0 : i32, i32, i32
  }
  func.func @transform_1(%arg0: i32) -> (i32, i32, i32) {
    %c0_i32 = arith.constant 0 : i32
    %c0_i32_0 = arith.constant 0 : i32
    %c0_i32_1 = arith.constant 0 : i32
    %c0_i32_2 = arith.constant 0 : i32
    return %c0_i32, %c0_i32_0, %c0_i32_1 : i32, i32, i32
  }
  func.func @transform_2(%arg0: i32) -> (i32, i32) {
    %c0_i32 = arith.constant 0 : i32
    %c0_i32_0 = arith.constant 0 : i32
    %c0_i32_1 = arith.constant 0 : i32
    return %c0_i32, %c0_i32_0 : i32, i32
  }
  func.func @transform_3(%arg0: i32) -> (i32, i32) {
    %c0_i32 = arith.constant 0 : i32
    %c0_i32_0 = arith.constant 0 : i32
    %c0_i32_1 = arith.constant 0 : i32
    return %c0_i32, %c0_i32_0 : i32, i32
  }
  func.func @transform_4(%arg0: i32) -> (i32, i32, i32) {
    %c0_i32 = arith.constant 0 : i32
    %c0_i32_0 = arith.constant 0 : i32
    %c0_i32_1 = arith.constant 0 : i32
    %c0_i32_2 = arith.constant 0 : i32
    return %c0_i32, %c0_i32_0, %c0_i32_1 : i32, i32, i32
  }
  func.func @transform_5(%arg0: i32) -> (i32, i32) {
    %c0_i32 = arith.constant 0 : i32
    %c0_i32_0 = arith.constant 0 : i32
    %c0_i32_1 = arith.constant 0 : i32
    return %c0_i32, %c0_i32_0 : i32, i32
  }
  func.func @transform_6(%arg0: i32) -> (i32, i32) {
    %c0_i32 = arith.constant 0 : i32
    %c0_i32_0 = arith.constant 0 : i32
    %c0_i32_1 = arith.constant 0 : i32
    return %c0_i32, %c0_i32_0 : i32, i32
  }
  func.func @transform_7(%arg0: i32) -> (i32, i32, i32) {
    %c0_i32 = arith.constant 0 : i32
    %c0_i32_0 = arith.constant 0 : i32
    %c0_i32_1 = arith.constant 0 : i32
    %c0_i32_2 = arith.constant 0 : i32
    return %c0_i32, %c0_i32_0, %c0_i32_1 : i32, i32, i32
  }
  func.func @transform_8(%arg0: i32) -> (i32, i32) {
    %c0_i32 = arith.constant 0 : i32
    %c0_i32_0 = arith.constant 0 : i32
    %c0_i32_1 = arith.constant 0 : i32
    return %c0_i32, %c0_i32_0 : i32, i32
  }
  func.func @transform_9(%arg0: i32) -> (i32, i32) {
    %c0_i32 = arith.constant 0 : i32
    %c0_i32_0 = arith.constant 0 : i32
    %c0_i32_1 = arith.constant 0 : i32
    return %c0_i32, %c0_i32_0 : i32, i32
  }
  func.func @transform_10(%arg0: i32) -> (i32, i32, i32) {
    %c0_i32 = arith.constant 0 : i32
    %c0_i32_0 = arith.constant 0 : i32
    %c0_i32_1 = arith.constant 0 : i32
    return %arg0, %c0_i32, %c0_i32_0 : i32, i32, i32
  }
}

</mosaic_0001>

<bundles_post_ra>
// kernel: tpu_custom_call.1
= control target key start
LH: loop header
LB: loop body
LE: loop exit
PB: predicated region body
PF: predicated region fallthrough
CT: control target
= control target key end

     0   :  { %s3307_s0 = inlined_call_operand.vmem [shape: f32[2,8,64], index: 0, kind: input, shape index: {}]   ;;  %s3308_s1 = inlined_call_operand.vmem [shape: bf16[9,16,8], index: 1, kind: input, shape index: {}]   ;;  %s3309_s2 = inlined_call_operand.vmem [shape: f32[16,1], index: 2, kind: input, shape index: {}]   ;;  %s3310_s3 = inlined_call_operand.vmem [shape: f32[16,1], index: 3, kind: input, shape index: {}]   ;;  %s3311_s4 = inlined_call_operand.vmem [shape: bf16[9,16,16], index: 4, kind: input, shape index: {}]   ;;  %s3312_s5 = inlined_call_operand.vmem [shape: f32[16,1], index: 5, kind: input, shape index: {}]   ;;  %s3313_s6 = inlined_call_operand.vmem [shape: f32[16,1], index: 6, kind: input, shape index: {}]   ;;  %s3314_s7 = inlined_call_operand.vmem [shape: bf16[9,16,16], index: 7, kind: input, shape index: {}]   ;;  %s3315_s8 = inlined_call_operand.vmem [shape: f32[16,1], index: 8, kind: input, shape index: {}]   ;;  %s3316_s9 = inlined_call_operand.vmem [shape: f32[16,1], index: 9, kind: input, shape index: {}]   ;;  %s3317_s10 = inlined_call_operand.hbm [shape: f32[2,16,64], index: 10, kind: output, shape index: {}]  }
   0x1   :  { %3334 = sst [smem:[#allocation7_spill]] %s3307_s0 }
   0x2   :  { %3335 = sst [smem:[#allocation8_spill]] %s3308_s1 }
   0x3   :  { %3336 = sst [smem:[#allocation9_spill]] %s3309_s2 }
   0x4   :  { %3337 = sst [smem:[#allocation10_spill]] %s3310_s3 }
   0x5   :  { %15 = vsyncpa [#allocation5], 0 }
   0x6   :  { %17 = vsyncpa [#allocation5 + $0x1], 0  ;;  %s2870_s13 = smov 0   ;;  %s2872_s14 = smov 0  }
   0x7   :  { %s2874_s15 = smov 0   ;;  %s2876_s16 = smov 0  }
   0x8 LB: > { %s2891_s17 = sadd.s32 4294967295, %s2798_s16   ;;  %s2192_s18 = sadd.s32 4294967294, %s2798_s16   ;;  %s2798_s16 = sphi %s2876_s16, %s3364_s16   ;;  %s2794_s15 = sphi %s2874_s15, %s3363_s15   ;;  %s2790_s14 = sphi %s2872_s14, %s3362_s14   ;;  %s2786_s13 = sphi %s2870_s13, %s3361_s13  }
   0x9   : > { %s2895_s19 = sadd.s32 1, %s2798_s16   ;;  %s245_s20 = sadd.s32 1, %s2794_s15 }
   0xa   : > { %s242_s21 = ssub.s32 %s2798_s16, %s2895_s19  ;;  %p255_p0 = scmp.ne.s32.totalorder %s2794_s15, %s2790_s14 }
   0xb   : > { %p243_p1 = scmp.eq.s32.totalorder %s242_s21, 0  ;;  %p256_p2 = scmp.eq.s32.totalorder %s2891_s17, 1 }
   0xc   : > { %p261_p3 = scmp.ne.s32.totalorder %s2790_s14, %s2786_s13  ;;  %p262_p4 = scmp.eq.s32.totalorder %s2192_s18, 1 }
   0xd   : > { %s2906_s22 = scalar_select %p243_p1, %s2794_s15, %s245_s20  }
   0xe   : > { %p2908_p5 = por %p256_p2, %p255_p0  ;;  %p2912_p6 = por %p262_p4, %p261_p3 }
   0xf   : > { %p2195_p7 = scmp.ge.s32.totalorder %s2798_s16, 1  ;;  %p314_p8 = scmp.lt.s32.totalorder %s2798_s16, 3 }
  0x11   : > { %p315_p9 = pnand %p2195_p7, %p314_p8 }
  0x12   : > { %p351_p10 = scmp.lt.s32.totalorder (!%p315_p9), %s2891_s17, 1  ;;  %vm372_vm0 = vcmask (!%p315_p9), 72704   ;;  %vm375_vm1 = vcmask (!%p315_p9), 671304   ;;  %v2800_v0 = vmov (!%p315_p9), 0.0   ;;  %s3340_s0 = sld [smem:[#allocation7_spill]] (!%p315_p9)  ;;  %vm387_vm2 = vcmask (!%p315_p9), 597064  }
  0x13   : > { %318 = sbr.rel (%p315_p9) target bundleno = 1676 (0x68c), region = 60  ;;  %373 = vst.msk [vmem:[#allocation2] sm:$0xff] (!%p315_p9), %vm372_vm0, %v2800_v0  ;;  %374 = vst.msk [vmem:[#allocation2 + $0x8] sm:$0xff] (!%p315_p9), %vm372_vm0, %v2800_v0  ;;  %2372 = vmatprep.subr.bf16.mxu0 (!%p315_p9), %v2800_v0  ;;  %2348 = vmatprep.subr.bf16.mxu1 (!%p315_p9), %v2800_v0  ;;  %s3330_s30 = smov (!%p315_p9), 9   ;;  %vm2802_vm3 = vmmov (!%p315_p9), 0   ;;  %v2811_v6 = vmov (!%p315_p9), 0   ;;  %v356_v10 = vlaneseq (!%p315_p9) }
  0x14   : > { %378 = vst.msk [vmem:[#allocation3] sm:$0xff] (!%p315_p9), %vm372_vm0, %v2800_v0  ;;  %379 = vst.msk [vmem:[#allocation3 + $0x8] sm:$0xff] (!%p315_p9), %vm372_vm0, %v2800_v0  ;;  %2374 = vmatprep.mubr.msk.bf16.mxu0 (!%p315_p9), %vm2802_vm3, %v2800_v0  ;;  %2350 = vmatprep.mubr.msk.bf16.mxu1 (!%p315_p9), %vm2802_vm3, %v2800_v0  ;;  %s3318_s11 = smov (!%p315_p9), 118   ;;  %s3324_s12 = smov (!%p315_p9), 119   ;;  %vm425_vm6 = vcmask (!%p315_p9), 1043456   ;;  %vm421_vm7 = vcmask (!%p315_p9), 64512  }
  0x15   : > { %376 = vst.msk [vmem:[#allocation2] sm:$0xff] (!%p315_p9), %vm375_vm1, %v2800_v0  ;;  %377 = vst.msk [vmem:[#allocation2 + $0x8] sm:$0xff] (!%p315_p9), %vm375_vm1, %v2800_v0  ;;  %s3333_s18 = smov (!%p315_p9), 127   ;;  %s3320_s20 = smov (!%p315_p9), 112   ;;  %2657 = vset.pattern.permute.xlu1 (!%p315_p9), %v2811_v6  ;;  %2658 = vset.pattern.permute.xlu0 (!%p315_p9), %v2811_v6  ;;  %v357_v11 = vand.u32 (!%p315_p9), 127, %v356_v10  ;;  %vm1003_vm8 = vcmask (!%p315_p9), 130048  }
  0x16   : > { %380 = vst.msk [vmem:[#allocation3] sm:$0xff] (!%p315_p9), %vm375_vm1, %v2800_v0  ;;  %381 = vst.msk [vmem:[#allocation3 + $0x8] sm:$0xff] (!%p315_p9), %vm375_vm1, %v2800_v0  ;;  %s3332_s21 = smov (!%p315_p9), 126   ;;  %s3328_s27 = smov (!%p315_p9), 110   ;;  %v2719_v14 = vld [vmem:[%s3311_s4] sm:$0xff] (!%p315_p9)   ;;  %v2720_v13 = vld [vmem:[%s3311_s4 + $0x10] sm:$0xff] (!%p315_p9)  }
  0x17   : > { %s3341_s2 = sld [smem:[#allocation9_spill]] (!%p315_p9)  ;;  %s3342_s3 = sld [smem:[#allocation10_spill]] (!%p315_p9)  ;;  %v362_v12 = vand.u32 (!%p315_p9), 7, %v357_v11  ;;  %vm2113_vm11 = vcmask (!%p315_p9), 523264  }
  0x18   : > { %s3347_s1 = sld [smem:[#allocation8_spill]] (!%p315_p9)  ;;  %s3352_s28 = smov (!%p315_p9), 110  }
  0x19   : > { %vm2959_vm4 = vcmp.ne.s32.totalorder (!%p315_p9), %v362_v12, 7  ;;  %vm2963_vm5 = vcmp.ne.s32.totalorder (!%p315_p9), %v362_v12, 0 }
  0x1a   : > { %s352_s25 = scalar_select %p351_p10, %s2891_s17, 1  ;;  %vm3082_vm9 = vmpackc.low %vm2963_vm5, %vm2963_vm5 }
  0x1b   : > { %vm3098_vm10 = vmpackc.low %vm2959_vm4, %vm2959_vm4 }
  0x1c   : > { %s2197_s26 = sshll.u32 %s352_s25, 3  ;;  %s3322_s25 = smov 111  }
  0x1d   : > { %s354_s29 = scalar_lea.vmem %s3340_s0, %s2197_s26  ;;  %s3326_s26 = smov 120   ;;  %v932_v5 = vld [vmem:[%s3341_s2] sm:$0xff]  ;;  %v933_v7 = vld [vmem:[%s3341_s2 + $0x8] sm:$0xff] }
  0x1e   : > { %v382_v1 = vld [vmem:[%s354_s29] sm:$0xff]  ;;  %v947_v9 = vld [vmem:[%s3342_s3 + $0x8] sm:$0xff]  ;;  %v2713_v41 = vld [vmem:[%s3347_s1 + $0x30] sm:$0xff]   ;;  %s3353_s29 = smov 111   ;;  %s3360_s0 = smov 127  }
  0x1f   : > { %384 = vrot.lane.b32.xlu0 %v382_v1, %s3330_s30  ;;  %v946_v8 = vld [vmem:[%s3342_s3] sm:$0xff]  ;;  %v2710_v24 = vld [vmem:[%s3347_s1 + $0x8] sm:$0xff]   ;;  %v2714_v43 = vld [vmem:[%s3347_s1 + $0x10] sm:$0xff]  }
  0x20   : > { %v2709_v21 = vld [vmem:[%s3347_s1 + $0x20] sm:$0xff]   ;;  %v2711_v33 = vld [vmem:[%s3347_s1 + $0x28] sm:$0xff]   ;;  %v2715_v49 = vld [vmem:[%s3347_s1 + $0x38] sm:$0xff]  }
  0x21   : > { %v2712_v35 = vld [vmem:[%s3347_s1] sm:$0xff]   ;;  %v2716_v50 = vld [vmem:[%s3347_s1 + $0x18] sm:$0xff]  }
  0x22   : > { %v2717_v52 = vld [vmem:[%s3347_s1 + $0x40] sm:$0xff]  }
  0x91   : > { %v385_v2 = vpop.permute.xlu0 %384 }
  0x92   : > { %388 = vst.msk [vmem:[#allocation2] sm:$0xff] %vm387_vm2, %v385_v2 }
  0x99   : > { %v407_v3 = vld [vmem:[#allocation2] sm:$0xff] }
  0x9a   : > { %699 = vrot.lane.b32.xlu1 %v407_v3, %s3318_s11  ;;  %v412_v4 = vpack.c.bf16 %v407_v3, %v407_v3  ;;  %v410_v18 = vsel %vm2963_vm5, %v407_v3, 0.0  ;;  %s3359_s11 = smov 126  }
  0x9b   : > { %v411_v25 = vpack.c.bf16 %v410_v18, %v410_v18  ;;  %v1522_v18 = vld [vmem:[%s3313_s6 + $0x8] sm:$0xff] }
  0x9c   : > { %648 = vrot.lane.b32.xlu0 %v412_v4, %s3324_s12  ;;  %s3358_s12 = smov 9  }
  0x9d   : > { %v479_v28 = vsel %vm425_vm6, %v411_v25, 0 }
  0x9e   : > { %419 = vrot.lane.b32.xlu1 %v412_v4, %s3333_s18 }
  0xa0   : > { %758 = vrot.lane.b32.xlu0 %v407_v3, %s3320_s20  ;;  %s3348_s20 = smov 119  }
  0xa2   : > { %525 = vrot.lane.b32.xlu1 %v407_v3, %s3332_s21 }
  0xa4   : > { %822 = vrot.lane.b32.xlu0 %v412_v4, %s3322_s25  ;;  %s3349_s25 = smov 120  }
  0xa6   : > { %584 = vrot.lane.b32.xlu1 %v407_v3, %s3326_s26  ;;  %s3350_s26 = smov 112  }
  0xa8   : > { %873 = vrot.lane.b32.xlu0 %v407_v3, %s3328_s27  ;;  %s3351_s27 = smov 118  }
  0xaa   : > { %936 = vperm.xlu1 %2657, %v932_v5  }
  0xac   : > { %941 = vperm.xlu0 %2658, %v933_v7  }
  0xae   : > { %950 = vperm.xlu1 %2657, %v946_v8  }
  0xb2   : > { %955 = vperm.xlu1 %2657, %v947_v9  }
 0x10c   : > { %v700_v15 = vpop.permute.xlu1 %699 }
 0x10d   : > { %v702_v16 = vsel %vm2959_vm4, %v700_v15, 0.0 }
 0x10e   : > { %v649_v17 = vpop.permute.xlu0 %648  ;;  %v703_v19 = vpack.c.bf16 %v702_v16, %v702_v16  ;;  %v1508_v16 = vld [vmem:[%s3312_s5 + $0x8] sm:$0xff] }
 0x10f   : > { %v654_v20 = vsel %vm425_vm6, %v649_v17, 0  ;;  %v1507_v17 = vld [vmem:[%s3312_s5] sm:$0xff] }
 0x110   : > { %v420_v22 = vpop.permute.xlu1 %419  ;;  %2373 = vmatpush3.bf16.msra.mxu0 %v654_v20  ;;  %v713_v26 = vsel %vm425_vm6, %v703_v19, 0  ;;  %v1521_v19 = vld [vmem:[%s3313_s6] sm:$0xff] }
 0x111   : > { %v427_v23 = vsel %vm425_vm6, %v420_v22, 0  ;;  %2378 = vmatprep.subr.bf16.mxu0 %v2800_v0 }
 0x112   : > { %2349 = vmatpush3.bf16.msra.mxu1 %v427_v23  ;;  %v759_v27 = vpop.permute.xlu0 %758 }
 0x113   : > { %2375 = vmatmul.mubr.msk.bf16.vlgmr.msra.gmra.mrb[0].mxu0 %vm421_vm7, %v2709_v21  ;;  %2354 = vmatprep.subr.bf16.mxu1 %v2800_v0  ;;  %v761_v30 = vsel %vm2963_vm5, %v759_v27, 0.0  ;;  %v2718_v21 = vld [vmem:[%s3311_s4 + $0x8] sm:$0xff]  }
 0x114   : > { %2379 = vmatpush3.bf16.msra.mxu0 %v713_v26  ;;  %2380 = vmatprep.mubr.msk.bf16.mxu0 %vm2802_vm3, %v2800_v0  ;;  %v526_v29 = vpop.permute.xlu1 %525  ;;  %v762_v32 = vpack.c.bf16 %v761_v30, %v761_v30 }
 0x115   : > { %2351 = vmatmul.mubr.msk.bf16.vlgmr.msra.gmra.mrb[0].mxu1 %vm421_vm7, %v2710_v24  ;;  %2384 = vmatprep.subr.bf16.mxu0 %v2800_v0  ;;  %v528_v31 = vsel %vm2959_vm4, %v526_v29, 0.0 }
 0x116   : > { %2355 = vmatpush3.bf16.msra.mxu1 %v479_v28  ;;  %2356 = vmatprep.mubr.msk.bf16.mxu1 %vm2802_vm3, %v2800_v0  ;;  %v529_v34 = vpack.c.bf16 %v528_v31, %v528_v31  ;;  %v772_v36 = vsel %vm425_vm6, %v762_v32, 0  ;;  %v823_v40 = vpop.permute.xlu0 %822  ;;  %v2721_v32 = vld [vmem:[%s3311_s4 + $0x18] sm:$0xff]  }
 0x117   : > { %2360 = vmatprep.subr.bf16.mxu1 %v2800_v0  ;;  %v828_v44 = vsel %vm425_vm6, %v823_v40, 0 }
 0x118   : > { %v539_v37 = vsel %vm425_vm6, %v529_v34, 0  ;;  %v585_v38 = vpop.permute.xlu1 %584 }
 0x119   : > { %v587_v39 = vsel %vm2963_vm5, %v585_v38, 0.0 }
 0x11a   : > { %v588_v42 = vpack.c.bf16 %v587_v39, %v587_v39  ;;  %v874_v46 = vpop.permute.xlu0 %873 }
 0x11b   : > { %v876_v47 = vsel %vm2959_vm4, %v874_v46, 0.0 }
 0x11c   : > { %v598_v45 = vsel %vm425_vm6, %v588_v42, 0  ;;  %v877_v48 = vpack.c.bf16 %v876_v47, %v876_v47  ;;  %v2723_v42 = vld [vmem:[%s3311_s4 + $0x28] sm:$0xff]  }
 0x11e   : > { %v887_v51 = vsel %vm425_vm6, %v877_v48, 0 }
 0x11f   : > { %2381 = vmatmul.mubr.msk.bf16.vlgmr.msra.gmra.mrb[0].mxu0 %vm421_vm7, %v2711_v33 }
 0x120   : > { %2385 = vmatpush3.bf16.msra.mxu0 %v772_v36  ;;  %2386 = vmatprep.mubr.msk.bf16.mxu0 %vm2802_vm3, %v2800_v0 }
 0x121   : > { %2357 = vmatmul.mubr.msk.bf16.vlgmr.msra.gmra.mrb[0].mxu1 %vm421_vm7, %v2712_v35  ;;  %2390 = vmatprep.subr.bf16.mxu0 %v2800_v0 }
 0x122   : > { %2361 = vmatpush3.bf16.msra.mxu1 %v539_v37  ;;  %2362 = vmatprep.mubr.msk.bf16.mxu1 %vm2802_vm3, %v2800_v0  ;;  %v2722_v37 = vld [vmem:[%s3311_s4 + $0x20] sm:$0xff]  }
 0x123   : > { %2366 = vmatprep.subr.bf16.mxu1 %v2800_v0 }
 0x129   : > { %v937_v57 = vpop.permute.xlu1 %936 }
 0x12b   : > { %2387 = vmatmul.mubr.msk.bf16.vlgmr.msra.gmra.mrb[0].mxu0 %vm421_vm7, %v2713_v41  ;;  %v942_v63 = vpop.permute.xlu0 %941 }
 0x12c   : > { %2391 = vmatpush3.bf16.msra.mxu0 %v828_v44  ;;  %2392 = vmatprep.mubr.msk.bf16.mxu0 %vm2802_vm3, %v2800_v0  ;;  %v2724_v44 = vld [vmem:[%s3311_s4 + $0x30] sm:$0xff]  }
 0x12d   : > { %2363 = vmatmul.mubr.msk.bf16.vlgmr.msra.gmra.mrb[0].mxu1 %vm421_vm7, %v2714_v43  ;;  %2396 = vmatprep.subr.bf16.mxu0 %v2800_v0  ;;  %v951_v58 = vpop.permute.xlu1 %950 }
 0x12e   : > { %2367 = vmatpush3.bf16.msra.mxu1 %v598_v45  ;;  %2368 = vmatprep.mubr.msk.bf16.mxu1 %vm2802_vm3, %v2800_v0 }
 0x12f   : > { %2402 = vmatprep.subr.bf16.mxu1 %v2800_v0 }
 0x131   : > { %v956_v6 = vpop.permute.xlu1 %955 }
 0x137   : > { %2393 = vmatmul.mubr.msk.bf16.vlgmr.msra.gmra.mrb[0].mxu0 %vm421_vm7, %v2715_v49  ;;  %v2725_v49 = vld [vmem:[%s3311_s4 + $0x38] sm:$0xff]  }
 0x138   : > { %2397 = vmatpush3.bf16.msra.mxu0 %v887_v51  ;;  %2398 = vmatprep.mubr.msk.bf16.mxu0 %vm2802_vm3, %v2800_v0  ;;  %v2726_v51 = vld [vmem:[%s3311_s4 + $0x40] sm:$0xff]  }
 0x139   : > { %2369 = vmatmul.mubr.msk.bf16.vlgmr.msra.gmra.mrb[0].mxu1 %vm421_vm7, %v2716_v50  ;;  %2456 = vmatprep.subr.bf16.mxu0 %v2800_v0 }
 0x13a   : > { %2404 = vmatprep.mubr.msk.bf16.mxu1 %vm2802_vm3, %v2800_v0 }
 0x143   : > { %2399 = vmatmul.mubr.msk.bf16.vlgmr.msra.gmra.mrb[0].mxu0 %vm421_vm7, %v2717_v52 }
 0x144   : > { %2458 = vmatprep.mubr.msk.bf16.mxu0 %vm2802_vm3, %v2800_v0 }
 0x20c   : > { %v634_v53 = vpop.f32.mrb[0].mxu1 }
 0x20d   : > { %v2370_v54 = vpop.f32.mrb[1].mxu1 }
 0x20e   : > { %v637_v55 = vpop.f32.mrb[2].mxu1 }
 0x20f   : > { %v2371_v56 = vpop.f32.mrb[3].mxu1 }
 0x216   : > { %v923_v59 = vpop.f32.mrb[0].mxu0 }
 0x217   : > { %v2510_v60 = vadd.f32 %v923_v59, %v634_v53  ;;  %v2400_v61 = vpop.f32.mrb[1].mxu0 }
 0x218   : > { %v926_v62 = vpop.f32.mrb[2].mxu0 }
 0x219   : > { %v944_v1 = vmul.f32 %v2510_v60, %v937_v57  ;;  %v2511_v2 = vadd.f32 %v926_v62, %v637_v55  ;;  %v2401_v3 = vpop.f32.mrb[3].mxu0 }
 0x21b   : > { %v945_v4 = vmul.f32 %v2511_v2, %v942_v63  ;;  %v958_v5 = vadd.f32 %v951_v58, %v944_v1 }
 0x21d   : > { %v959_v7 = vadd.f32 %v956_v6, %v945_v4  ;;  %962 = vrot.lane.b32.xlu0 %v958_v5, %s3330_s30 }
 0x21f   : > { %964 = vrot.lane.b32.xlu1 %v959_v7, %s3330_s30 }
 0x28f   : > { %v963_v8 = vpop.permute.xlu0 %962 }
 0x290   : > { %968 = vst.msk [vmem:[#allocation3] sm:$0xff] %vm387_vm2, %v963_v8 }
 0x291   : > { %v965_v9 = vpop.permute.xlu1 %964 }
 0x292   : > { %969 = vst.msk [vmem:[#allocation3 + $0x8] sm:$0xff] %vm387_vm2, %v965_v9  ;;  %v2084_v9 = vld [vmem:[%s3315_s8 + $0x8] sm:$0xff] }
 0x297   : > { %v988_v10 = vld [vmem:[#allocation3] sm:$0xff] }
 0x299   : > { %v989_v11 = vld [vmem:[#allocation3 + $0x8] sm:$0xff] }
 0x29a   : > { %v2659_v12 = vpack.i.bf16 %v989_v11, %v988_v10  ;;  %v993_v15 = vpack.c.bf16 %v989_v11, %v988_v10  ;;  %v2083_v10 = vld [vmem:[%s3315_s8] sm:$0xff]  ;;  %v2098_v11 = vld [vmem:[%s3316_s9 + $0x8] sm:$0xff] }
 0x29c   : > { %2660 = vrot.lane.b32.xlu1 %v2659_v12, %s3332_s21  ;;  %1000 = vrot.lane.b32.xlu0 %v993_v15, %s3333_s18  ;;  %s348_s21 = sand.u32 1, %s2790_s14  }
 0x2a0   : > { %1224 = vrot.lane.b32.xlu1 %v993_v15, %s3348_s20  ;;  %2665 = vrot.lane.b32.xlu0 %v2659_v12, %s3349_s25 }
 0x2a4   : > { %2675 = vrot.lane.b32.xlu1 %v2659_v12, %s3350_s26  ;;  %2670 = vrot.lane.b32.xlu0 %v2659_v12, %s3351_s27 }
 0x2a8   : > { %2680 = vrot.lane.b32.xlu1 %v2659_v12, %s3352_s28  ;;  %1398 = vrot.lane.b32.xlu0 %v993_v15, %s3353_s29  ;;  %v2097_v12 = vld [vmem:[%s3316_s9] sm:$0xff] }
 0x2ac   : > { %1516 = vperm.xlu1 %2657, %v1508_v16   ;;  %1511 = vperm.xlu0 %2658, %v1507_v17   ;;  %v2727_v16 = vld [vmem:[%s3314_s7 + $0x8] sm:$0xff]  }
 0x2b0   : > { %1530 = vperm.xlu1 %2657, %v1522_v18   ;;  %1525 = vperm.xlu0 %2658, %v1521_v19  }
 0x30e   : > { %v1001_v20 = vpop.permute.xlu0 %1000  ;;  %v2661_v23 = vpop.permute.xlu1 %2660 }
 0x30f   : > { %2403 = vmatpush3.bf16.msra.mxu1 %v1001_v20  ;;  %v2663_v24 = vunpack.i.h.bf16 %v2661_v23  ;;  %v2662_v25 = vunpack.i.l.bf16 %v2661_v23  ;;  %v2728_v20 = vld [vmem:[%s3314_s7] sm:$0xff]  }
 0x310   : > { %2408 = vmatprep.subr.bf16.mxu1 %v2800_v0 }
 0x311   : > { %v2225_v27 = vpack.c.bf16 %v2663_v24, %v2662_v25 }
 0x312   : > { %2405 = vmatmul.mubr.msk.bf16.vlgmr.msra.gmra.mrb[4].mxu1 %vm1003_vm8, %v2718_v21  ;;  %v2666_v28 = vpop.permute.xlu0 %2665  ;;  %v1225_v33 = vpop.permute.xlu1 %1224 }
 0x313   : > { %2409 = vmatpush3.bf16.msk.msra.mxu1 %vm3082_vm9, %v993_v15  ;;  %2410 = vmatprep.mubr.msk.bf16.mxu1 %vm2802_vm3, %v2800_v0  ;;  %v2668_v29 = vunpack.i.h.bf16 %v2666_v28  ;;  %v2667_v30 = vunpack.i.l.bf16 %v2666_v28  ;;  %v2730_v28 = vld [vmem:[%s3314_s7 + $0x18] sm:$0xff]  }
 0x314   : > { %2414 = vmatprep.subr.bf16.mxu1 %v2800_v0 }
 0x315   : > { %v2230_v31 = vpack.c.bf16 %v2668_v29, %v2667_v30 }
 0x316   : > { %v2671_v34 = vpop.permute.xlu0 %2670  ;;  %v2676_v39 = vpop.permute.xlu1 %2675 }
 0x317   : > { %v2673_v35 = vunpack.i.h.bf16 %v2671_v34  ;;  %v2672_v36 = vunpack.i.l.bf16 %v2671_v34  ;;  %v2678_v40 = vunpack.i.h.bf16 %v2676_v39  ;;  %v2677_v41 = vunpack.i.l.bf16 %v2676_v39  ;;  %v2733_v39 = vld [vmem:[%s3314_s7 + $0x30] sm:$0xff]  }
 0x319   : > { %v2237_v38 = vpack.c.bf16 %v2673_v35, %v2672_v36  ;;  %v2242_v43 = vpack.c.bf16 %v2678_v40, %v2677_v41 }
 0x31a   : > { %v1399_v45 = vpop.permute.xlu0 %1398  ;;  %v2681_v46 = vpop.permute.xlu1 %2680 }
 0x31b   : > { %v2683_v47 = vunpack.i.h.bf16 %v2681_v46  ;;  %v2682_v48 = vunpack.i.l.bf16 %v2681_v46 }
 0x31d   : > { %v2249_v50 = vpack.c.bf16 %v2683_v47, %v2682_v48 }
 0x31e   : > { %2411 = vmatmul.mubr.msk.bf16.vlgmr.msra.gmra.mrb[4].mxu1 %vm1003_vm8, %v2719_v14  ;;  %v2729_v14 = vld [vmem:[%s3314_s7 + $0x10] sm:$0xff]  }
 0x31f   : > { %2415 = vmatpush3.bf16.msk.msra.mxu1 %vm3098_vm10, %v2225_v27  ;;  %2416 = vmatprep.mubr.msk.bf16.mxu1 %vm2802_vm3, %v2800_v0 }
 0x320   : > { %2420 = vmatprep.subr.bf16.mxu1 %v2800_v0 }
 0x32a   : > { %2417 = vmatmul.mubr.msk.bf16.vlgmr.msra.gmra.mrb[4].mxu1 %vm1003_vm8, %v2720_v13 }
 0x32b   : > { %2421 = vmatpush3.bf16.msk.msra.mxu1 %vm3082_vm9, %v2230_v31  ;;  %2422 = vmatprep.mubr.msk.bf16.mxu1 %vm2802_vm3, %v2800_v0  ;;  %v1512_v52 = vpop.permute.xlu0 %1511  ;;  %v1517_v53 = vpop.permute.xlu1 %1516 }
 0x32c   : > { %2426 = vmatprep.subr.bf16.mxu1 %v2800_v0 }
 0x32f   : > { %v1526_v57 = vpop.permute.xlu0 %1525  ;;  %v1531_v62 = vpop.permute.xlu1 %1530 }
 0x336   : > { %2423 = vmatmul.mubr.msk.bf16.vlgmr.msra.gmra.mrb[4].mxu1 %vm1003_vm8, %v2721_v32  ;;  %v2731_v32 = vld [vmem:[%s3314_s7 + $0x20] sm:$0xff]  }
 0x337   : > { %2427 = vmatpush3.bf16.msra.mxu1 %v1225_v33  ;;  %2428 = vmatprep.mubr.msk.bf16.mxu1 %vm2802_vm3, %v2800_v0 }
 0x338   : > { %2432 = vmatprep.subr.bf16.mxu1 %v2800_v0 }
 0x342   : > { %2429 = vmatmul.mubr.msk.bf16.vlgmr.msra.gmra.mrb[4].mxu1 %vm1003_vm8, %v2722_v37  ;;  %v2732_v37 = vld [vmem:[%s3314_s7 + $0x28] sm:$0xff]  }
 0x343   : > { %2433 = vmatpush3.bf16.msk.msra.mxu1 %vm3098_vm10, %v2237_v38  ;;  %2434 = vmatprep.mubr.msk.bf16.mxu1 %vm2802_vm3, %v2800_v0 }
 0x344   : > { %2438 = vmatprep.subr.bf16.mxu1 %v2800_v0 }
 0x34e   : > { %2435 = vmatmul.mubr.msk.bf16.vlgmr.msra.gmra.mrb[4].mxu1 %vm1003_vm8, %v2723_v42 }
 0x34f   : > { %2439 = vmatpush3.bf16.msk.msra.mxu1 %vm3082_vm9, %v2242_v43  ;;  %2440 = vmatprep.mubr.msk.bf16.mxu1 %vm2802_vm3, %v2800_v0  ;;  %v2734_v43 = vld [vmem:[%s3314_s7 + $0x38] sm:$0xff]  }
 0x350   : > { %2444 = vmatprep.subr.bf16.mxu1 %v2800_v0 }
 0x35a   : > { %2441 = vmatmul.mubr.msk.bf16.vlgmr.msra.gmra.mrb[4].mxu1 %vm1003_vm8, %v2724_v44 }
 0x35b   : > { %2445 = vmatpush3.bf16.msra.mxu1 %v1399_v45  ;;  %2446 = vmatprep.mubr.msk.bf16.mxu1 %vm2802_vm3, %v2800_v0  ;;  %v2735_v45 = vld [vmem:[%s3314_s7 + $0x40] sm:$0xff]  }
 0x35c   : > { %2450 = vmatprep.subr.bf16.mxu1 %v2800_v0 }
 0x366   : > { %2447 = vmatmul.mubr.msk.bf16.vlgmr.msra.gmra.mrb[4].mxu1 %vm1003_vm8, %v2725_v49 }
 0x367   : > { %2451 = vmatpush3.bf16.msk.msra.mxu1 %vm3098_vm10, %v2249_v50  ;;  %2452 = vmatprep.mubr.msk.bf16.mxu1 %vm2802_vm3, %v2800_v0 }
 0x372   : > { %2453 = vmatmul.mubr.msk.bf16.vlgmr.msra.gmra.mrb[4].mxu1 %vm1003_vm8, %v2726_v51 }
 0x445   : > { %v1498_v54 = vpop.f32.mrb[4].mxu1 }
 0x446   : > { %v1519_v55 = vmul.f32 %v1512_v52, %v1498_v54  ;;  %v2454_v56 = vpop.f32.mrb[5].mxu1 }
 0x447   : > { %v1501_v58 = vpop.f32.mrb[6].mxu1 }
 0x448   : > { %v1533_v59 = vadd.f32 %v1526_v57, %v1519_v55  ;;  %v1520_v60 = vmul.f32 %v1517_v53, %v1501_v58  ;;  %v2455_v61 = vpop.f32.mrb[7].mxu1 }
 0x44a   : > { %v1535_v63 = vmax.f32 %v1533_v59, 0.0  ;;  %v1534_v1 = vadd.f32 %v1531_v62, %v1520_v60 }
 0x44c   : > { %v1536_v2 = vmax.f32 %v1534_v1, 0.0  ;;  %1539 = vrot.lane.b32.xlu0 %v1535_v63, %s3358_s12 }
 0x44e   : > { %1541 = vrot.lane.b32.xlu1 %v1536_v2, %s3358_s12  ;;  %s2196_s12 = sshll.u32 %s348_s21, 4 }
 0x4be   : > { %v1540_v3 = vpop.permute.xlu0 %1539 }
 0x4bf   : > { %1545 = vst.msk [vmem:[#allocation2] sm:$0xff] %vm387_vm2, %v1540_v3 }
 0x4c0   : > { %v1542_v4 = vpop.permute.xlu1 %1541 }
 0x4c1   : > { %1546 = vst.msk [vmem:[#allocation2 + $0x8] sm:$0xff] %vm387_vm2, %v1542_v4 }
 0x4c6   : > { %v1565_v5 = vld [vmem:[#allocation2] sm:$0xff] }
 0x4c8   : > { %v1566_v6 = vld [vmem:[#allocation2 + $0x8] sm:$0xff] }
 0x4c9   : > { %v2684_v7 = vpack.i.bf16 %v1566_v6, %v1565_v5  ;;  %v1570_v8 = vpack.c.bf16 %v1566_v6, %v1565_v5 }
 0x4cb   : > { %2685 = vrot.lane.b32.xlu1 %v2684_v7, %s3359_s11  ;;  %1577 = vrot.lane.b32.xlu0 %v1570_v8, %s3360_s0  ;;  %s2293_s11 = sshll.u32 %s2891_s17, 8  ;;  %s350_s0 = scalar_lea.vmem [#allocation4], %s2196_s12 }
 0x4cc   : > { %s2130_s1 = sshll.u32 %s350_s0, 4  ;;  %s3262_s30 = scalar_lea.hbm %s3317_s10, %s2293_s11  ;;  %s3264_s1 = int_to_ptr.vmem [resolvable:$true] %s2130_s1 }
 0x4cd   : > { %s3266_s17 = scalar_lea.sflag [#allocation5], %s348_s21 }
 0x4cf   : > { %1800 = vrot.lane.b32.xlu1 %v1570_v8, %s3348_s20  ;;  %2690 = vrot.lane.b32.xlu0 %v2684_v7, %s3349_s25  ;;  %s2736_s20 = scalar_lea.vmem %s3264_s1, 256  ;;  %s2812_s25 = smov [#allocation4]  }
 0x4d0   : > { %p2737_p11 = scmp.ne.s32.totalorder %s3264_s1, %s2736_s20 }
 0x4d2   : > { %p2738_p12 = pnand %p2737_p11, %p2908_p5 }
 0x4d3   : > { %2700 = vrot.lane.b32.xlu1 %v2684_v7, %s3350_s26  ;;  %2695 = vrot.lane.b32.xlu0 %v2684_v7, %s3351_s27  ;;  %s2740_s26 = sshll.u32 %s2812_s25, 4  ;;  %s2741_s26 = int_to_ptr.vmem [resolvable:$false] %s2740_s26 }
 0x4d4   : > { %p2739_p13 = pneg %p2738_p12  ;;  %s2742_s27 = scalar_lea.vmem %s2741_s26, 512 }
 0x4d5   : > { %p2743_p0 = scmp.lt.s32.totalorder %s3264_s1, %s2741_s26  ;;  %p2744_p1 = scmp.lt.s32.totalorder %s2742_s27, %s2736_s20 }
 0x4d7   : > { %2705 = vrot.lane.b32.xlu1 %v2684_v7, %s3352_s28  ;;  %1974 = vrot.lane.b32.xlu0 %v1570_v8, %s3353_s29  ;;  %p2745_p2 = por %p2744_p1, %p2743_p0 }
 0x4d9   : > { %p2746_p3 = pnand %p2745_p2, %p2739_p13 }
 0x4db   : > { %2092 = vperm.xlu1 %2657, %v2084_v9   ;;  %2087 = vperm.xlu0 %2658, %v2083_v10  }
 0x4df   : > { %2106 = vperm.xlu1 %2657, %v2098_v11   ;;  %2101 = vperm.xlu0 %2658, %v2097_v12  }
 0x53d   : > { %v1578_v15 = vpop.permute.xlu0 %1577  ;;  %v2686_v17 = vpop.permute.xlu1 %2685 }
 0x53e   : > { %2457 = vmatpush3.bf16.msra.mxu0 %v1578_v15  ;;  %v2688_v18 = vunpack.i.h.bf16 %v2686_v17  ;;  %v2687_v19 = vunpack.i.l.bf16 %v2686_v17 }
 0x53f   : > { %2462 = vmatprep.subr.bf16.mxu0 %v2800_v0 }
 0x540   : > { %v2261_v21 = vpack.c.bf16 %v2688_v18, %v2687_v19 }
 0x541   : > { %2459 = vmatmul.mubr.msk.bf16.vlgmr.msra.gmra.mrb[4].mxu0 %vm1003_vm8, %v2727_v16  ;;  %v2691_v23 = vpop.permute.xlu0 %2690  ;;  %v1801_v29 = vpop.permute.xlu1 %1800 }
 0x542   : > { %2463 = vmatpush3.bf16.msk.msra.mxu0 %vm3082_vm9, %v1570_v8  ;;  %2464 = vmatprep.mubr.msk.bf16.mxu0 %vm2802_vm3, %v2800_v0  ;;  %v2693_v24 = vunpack.i.h.bf16 %v2691_v23  ;;  %v2692_v25 = vunpack.i.l.bf16 %v2691_v23 }
 0x543   : > { %2468 = vmatprep.subr.bf16.mxu0 %v2800_v0 }
 0x544   : > { %v2266_v27 = vpack.c.bf16 %v2693_v24, %v2692_v25 }
 0x545   : > { %v2696_v30 = vpop.permute.xlu0 %2695  ;;  %v2701_v34 = vpop.permute.xlu1 %2700 }
 0x546   : > { %v2698_v13 = vunpack.i.h.bf16 %v2696_v30  ;;  %v2697_v31 = vunpack.i.l.bf16 %v2696_v30  ;;  %v2703_v35 = vunpack.i.h.bf16 %v2701_v34  ;;  %v2702_v36 = vunpack.i.l.bf16 %v2701_v34 }
 0x548   : > { %v2273_v33 = vpack.c.bf16 %v2698_v13, %v2697_v31  ;;  %v2278_v38 = vpack.c.bf16 %v2703_v35, %v2702_v36 }
 0x549   : > { %v1975_v40 = vpop.permute.xlu0 %1974  ;;  %v2706_v22 = vpop.permute.xlu1 %2705 }
 0x54a   : > { %v2708_v41 = vunpack.i.h.bf16 %v2706_v22  ;;  %v2707_v42 = vunpack.i.l.bf16 %v2706_v22 }
 0x54c   : > { %v2285_v44 = vpack.c.bf16 %v2708_v41, %v2707_v42 }
 0x54d   : > { %2465 = vmatmul.mubr.msk.bf16.vlgmr.msra.gmra.mrb[4].mxu0 %vm1003_vm8, %v2728_v20 }
 0x54e   : > { %2469 = vmatpush3.bf16.msk.msra.mxu0 %vm3098_vm10, %v2261_v21  ;;  %2470 = vmatprep.mubr.msk.bf16.mxu0 %vm2802_vm3, %v2800_v0 }
 0x54f   : > { %2474 = vmatprep.subr.bf16.mxu0 %v2800_v0 }
 0x559   : > { %2471 = vmatmul.mubr.msk.bf16.vlgmr.msra.gmra.mrb[4].mxu0 %vm1003_vm8, %v2729_v14 }
 0x55a   : > { %2475 = vmatpush3.bf16.msk.msra.mxu0 %vm3082_vm9, %v2266_v27  ;;  %2476 = vmatprep.mubr.msk.bf16.mxu0 %vm2802_vm3, %v2800_v0  ;;  %v2088_v46 = vpop.permute.xlu0 %2087  ;;  %v2093_v47 = vpop.permute.xlu1 %2092 }
 0x55b   : > { %2480 = vmatprep.subr.bf16.mxu0 %v2800_v0 }
 0x55e   : > { %v2102_v51 = vpop.permute.xlu0 %2101 }
 0x565   : > { %2477 = vmatmul.mubr.msk.bf16.vlgmr.msra.gmra.mrb[4].mxu0 %vm1003_vm8, %v2730_v28 }
 0x566   : > { %2481 = vmatpush3.bf16.msra.mxu0 %v1801_v29  ;;  %2482 = vmatprep.mubr.msk.bf16.mxu0 %vm2802_vm3, %v2800_v0 }
 0x567   : > { %2486 = vmatprep.subr.bf16.mxu0 %v2800_v0 }
 0x571   : > { %2483 = vmatmul.mubr.msk.bf16.vlgmr.msra.gmra.mrb[4].mxu0 %vm1003_vm8, %v2731_v32 }
 0x572   : > { %2487 = vmatpush3.bf16.msk.msra.mxu0 %vm3098_vm10, %v2273_v33  ;;  %2488 = vmatprep.mubr.msk.bf16.mxu0 %vm2802_vm3, %v2800_v0 }
 0x573   : > { %2492 = vmatprep.subr.bf16.mxu0 %v2800_v0 }
 0x57d   : > { %2489 = vmatmul.mubr.msk.bf16.vlgmr.msra.gmra.mrb[4].mxu0 %vm1003_vm8, %v2732_v37 }
 0x57e   : > { %2493 = vmatpush3.bf16.msk.msra.mxu0 %vm3082_vm9, %v2278_v38  ;;  %2494 = vmatprep.mubr.msk.bf16.mxu0 %vm2802_vm3, %v2800_v0 }
 0x57f   : > { %2498 = vmatprep.subr.bf16.mxu0 %v2800_v0 }
 0x589   : > { %2495 = vmatmul.mubr.msk.bf16.vlgmr.msra.gmra.mrb[4].mxu0 %vm1003_vm8, %v2733_v39 }
 0x58a   : > { %2499 = vmatpush3.bf16.msra.mxu0 %v1975_v40  ;;  %2500 = vmatprep.mubr.msk.bf16.mxu0 %vm2802_vm3, %v2800_v0 }
 0x58b   : > { %2504 = vmatprep.subr.bf16.mxu0 %v2800_v0 }
 0x595   : > { %2501 = vmatmul.mubr.msk.bf16.vlgmr.msra.gmra.mrb[4].mxu0 %vm1003_vm8, %v2734_v43 }
 0x596   : > { %2505 = vmatpush3.bf16.msk.msra.mxu0 %vm3098_vm10, %v2285_v44  ;;  %2506 = vmatprep.mubr.msk.bf16.mxu0 %vm2802_vm3, %v2800_v0  ;;  %v2107_v0 = vpop.permute.xlu1 %2106 }
 0x5a1   : > { %2507 = vmatmul.mubr.msk.bf16.vlgmr.msra.gmra.mrb[4].mxu0 %vm1003_vm8, %v2735_v45 }
 0x674   : > { %v2074_v48 = vpop.f32.mrb[4].mxu0 }
 0x675   : > { %v2095_v49 = vmul.f32 %v2088_v46, %v2074_v48  ;;  %v2508_v50 = vpop.f32.mrb[5].mxu0 }
 0x676   : > { %v2077_v26 = vpop.f32.mrb[6].mxu0 }
 0x677   : > { %v2109_v52 = vadd.f32 %v2102_v51, %v2095_v49  ;;  %v2096_v53 = vmul.f32 %v2093_v47, %v2077_v26  ;;  %v2509_v54 = vpop.f32.mrb[7].mxu0 }
 0x679   : > { %v2111_v55 = vmax.f32 %v2109_v52, 0.0  ;;  %v2110_v56 = vadd.f32 %v2107_v0, %v2096_v53 }
 0x67b   : > { %2114 = vst.msk [vmem:[%s350_s0] sm:$0xff] %vm2113_vm11, %v2111_v55  ;;  %v2112_v57 = vmax.f32 %v2110_v56, 0.0 }
 0x67d   : > { %2115 = vst.msk [vmem:[%s350_s0 + $0x8] sm:$0xff] %vm2113_vm11, %v2112_v57 }
 0x67e   : > { %2749 = shalt.err (!%p2746_p3)
}
 0x67f   : > { %s2750_s28 = scalar_lea.hbm %s3262_s30, 256  ;;  %s2754_s21 = scalar_lea.hbm %s3317_s10, 512 }
 0x680   : > { %p2751_p4 = scmp.ne.s32.totalorder %s3262_s30, %s2750_s28  ;;  %p2755_p9 = scmp.lt.u32.totalorder %s3262_s30, %s3317_s10 }
 0x681   : > { %p2756_p10 = scmp.lt.u32.totalorder %s2754_s21, %s2750_s28  ;;  %p2758_p12 = scmp.lt.u32.totalorder %s2750_s28, %s3262_s30 }
 0x682   : > { %p2752_p7 = pnand %p2751_p4, %p2908_p5 }
 0x683   : > { %p2757_p11 = por %p2756_p10, %p2755_p9 }
 0x684   : > { %p2753_p8 = pneg %p2752_p7 }
 0x685   : > { %p2759_p13 = por %p2758_p12, %p2757_p11 }
 0x687   : > { %p2760_p0 = pnand %p2759_p13, %p2753_p8 }
 0x689   : > { %2763 = shalt.err (!%p2760_p0)
}
 0x68a   : > { %s2813_s0 = smov 128   ;;  %s2814_s2 = smov 8  }
 0x68b   : > { %2604 = dma.vmem_to_hbm [thread:$0]  (%p2908_p5), %s3264_s1, 256, %s3262_s30, %s3266_s17, %s2813_s0, %s2813_s0, %s2814_s2  }
 0x68c PF: > { %p2610_p1 = scmp.ge.s32.totalorder %s2798_s16, 2  ;;  %s2145_s3 = sand.u32 1, %s2786_s13  }
 0x68d   : > { %s2146_s20 = scalar_lea.sflag [#allocation5], %s2145_s3 }
 0x68e   : > { %p2607_p2 = pnand %p2610_p1, %p2912_p6 }
 0x690   : > { %2781 = dma.done.wait (!%p2607_p2), %s2146_s20, 256  }
 0x691   : > { %2783 = vsyncadd (!%p2607_p2), %s2146_s20, 4294967040  ;;  %p20_p3 = scmp.ge.s32.totalorder %s2895_s19, 4   ;;  %s3361_s13 = smov %s2790_s14 }
 0x692   : > { %s3362_s14 = smov %s2794_s15  ;;  %s3363_s15 = smov %s2906_s22 }
 0x693   : > { %s3364_s16 = smov %s2895_s19  ;;  %22 = sbr.rel (!%p20_p3) target bundleno = 8 (0x8), region = 95 }
 0x69a   :  { %2151 = vsyncpa [#allocation5], 1 }
 0x69b   :  { %2153 = vsyncpa [#allocation5 + $0x1], 1 }

</bundles_post_ra>
